<compile_context>
chip_gen: v6e
topology: v6e:2x2x1
jax: 0.10.0
libtpu: 0.0.40
codegen_flags: <defaults>
</compile_context>

<pallas_src>
import functools

import jax
import jax.numpy as jnp
from jax import lax
from jax.experimental import pallas as pl
from jax.experimental.pallas import tpu as pltpu

EPS = 1e-5  # PyTorch InstanceNorm2d default eps


def _residual_block_kernel(xf_ref, w1_ref, g1_ref, b1_ref, w2_ref, g2_ref, b2_ref,
                           o_ref, pad_scr, *, H, W, WP, L, LP):
    """Fused residual block for one batch tile (lane-dense flattened layout).

    xf_ref : (B, C, EXT_P)   zero-padded flattened input, EXT_P = 4*WP + LP
    w1_ref : (9, Cout, C)    conv1 weights, tap-major (t = dy*3 + dx)
    g1/b1  : (Cout, 1)       InstanceNorm1 affine params
    w2_ref : (9, Cout, Cout) conv2 weights, tap-major
    g2/b2  : (Cout, 1)       InstanceNorm2 affine params
    o_ref  : (B, Cout, LP)   output over the lane-padded extended span
    pad_scr: (Cout, EXT_P)   VMEM zero-framed intermediate (conv2's padded input)
    """
    B = o_ref.shape[0]
    C = xf_ref.shape[1]
    EXT_P = xf_ref.shape[2]
    Cout = o_ref.shape[1]
    inv_hw = 1.0 / float(H * W)

    # Validity mask over the lane-padded span: real pixels only.
    lane = lax.broadcasted_iota(jnp.int32, (1, LP), 1)
    jp = lane % WP
    mask = jnp.logical_and(jnp.logical_and(jp >= 1, jp <= W), lane < L)

    # Affine params, loaded once per grid step.
    g1 = g1_ref[...].astype(jnp.float32)
    b1 = b1_ref[...].astype(jnp.float32)
    g2 = g2_ref[...].astype(jnp.float32)
    b2 = b2_ref[...].astype(jnp.float32)

    # Zero the frame of the staging buffer once per grid step (the interior
    # write never touches it).  Kept unconditional so per-core scratch is
    # always initialized when the batch axis is sharded across TensorCores.
    pad_scr[:, 0:2 * WP] = jnp.zeros((Cout, 2 * WP), pad_scr.dtype)
    pad_scr[:, 2 * WP + LP:EXT_P] = jnp.zeros((Cout, EXT_P - 2 * WP - LP), pad_scr.dtype)

    for b in range(B):
        # ---- conv1: nine accumulating tap matmuls straight from ref slices ----
        acc1 = jnp.zeros((Cout, LP), jnp.float32)
        for t in range(9):
            dy, dx = t // 3, t % 3
            s = (dy + 1) * WP + dx - 1
            acc1 = acc1 + jnp.dot(w1_ref[t], xf_ref[b, :, s:s + LP],
                                  preferred_element_type=jnp.float32)

        # ---- InstanceNorm1 (masked single-pass stats) + ReLU ----
        m1 = jnp.where(mask, acc1, 0.0)
        mean1 = jnp.sum(m1, axis=1, keepdims=True) * inv_hw
        var1 = jnp.sum(m1 * acc1, axis=1, keepdims=True) * inv_hw - mean1 * mean1
        var1 = jnp.maximum(var1, 0.0)
        scale1 = g1 * lax.rsqrt(var1 + EPS)
        shift1 = b1 - mean1 * scale1
        y = jnp.maximum(acc1 * scale1 + shift1, 0.0)
        y = jnp.where(mask, y, 0.0)            # padded lanes must be exact zeros

        # ---- stage intermediate into the zero-framed padded buffer ----
        pad_scr[:, 2 * WP:2 * WP + LP] = y.astype(pad_scr.dtype)

        # ---- conv2: nine accumulating tap matmuls from pad_scr ref slices ----
        acc2 = jnp.zeros((Cout, LP), jnp.float32)
        for t in range(9):
            dy, dx = t // 3, t % 3
            s = (dy + 1) * WP + dx - 1
            acc2 = acc2 + jnp.dot(w2_ref[t], pad_scr[:, s:s + LP],
                                  preferred_element_type=jnp.float32)

        # ---- InstanceNorm2 ----
        m2 = jnp.where(mask, acc2, 0.0)
        mean2 = jnp.sum(m2, axis=1, keepdims=True) * inv_hw
        var2 = jnp.sum(m2 * acc2, axis=1, keepdims=True) * inv_hw - mean2 * mean2
        var2 = jnp.maximum(var2, 0.0)
        scale2 = g2 * lax.rsqrt(var2 + EPS)
        shift2 = b2 - mean2 * scale2
        z = acc2 * scale2 + shift2

        # ---- residual add: original x lives at the interior span of xf ----
        res = xf_ref[b, :, 2 * WP:2 * WP + LP].astype(jnp.float32)
        o_ref[b] = (res + z).astype(o_ref.dtype)


def residual_block(x_nchw, w1_oihw, g1, b1, w2_oihw, g2, b2,
                   *, compute_dtype=None, b_tile=None):
    """x_nchw: (N, C, H, W); conv weights in PyTorch OIHW. Returns NCHW.

    compute_dtype: optional MXU operand dtype (e.g. jnp.bfloat16 on
    v5e/v6e/v7x for the native bf16 MXU path); defaults to the input dtype.
    """
    N, C, H, W = x_nchw.shape
    Cout = w1_oihw.shape[0]
    assert C == Cout, "residual add requires dim_in == dim_out"

    compute_dtype = x_nchw.dtype if compute_dtype is None else jnp.dtype(compute_dtype)

    WP = W + 2                                   # padded width
    L = H * WP                                   # real flattened span
    LP = ((L + 127) // 128) * 128                # lane-aligned matmul N / output width
    EXT_P = 4 * WP + LP                          # extended padded span (covers all taps)

    # Batch tile: amortize per-step overhead but keep >= 2 grid steps so both
    # v7x TensorCores get work.
    if b_tile is None:
        b_tile = 1
        for cand in (4, 2):
            if N % cand == 0 and N // cand >= 2:
                b_tile = cand
                break
    assert N % b_tile == 0, "batch must be divisible by the batch tile"

    # Zero-pad 2 rows top/bottom + 1 col left/right, flatten spatial, then pad
    # the flattened axis up to EXT_P.  Real pixel (i, j) lands at 2*WP + i*WP + (j+1).
    xpad = jnp.pad(x_nchw, ((0, 0), (0, 0), (2, 2), (1, 1)))
    xf = xpad.reshape(N, C, (H + 4) * WP)
    xf = jnp.pad(xf, ((0, 0), (0, 0), (0, EXT_P - (H + 4) * WP))).astype(compute_dtype)

    # Pack conv weights OIHW -> tap-major (9, O, I); tap t = dy*3 + dx.
    w1p = jnp.transpose(w1_oihw, (2, 3, 0, 1)).reshape(9, Cout, C).astype(compute_dtype)
    w2p = jnp.transpose(w2_oihw, (2, 3, 0, 1)).reshape(9, Cout, Cout).astype(compute_dtype)
    g1_, b1_ = g1.reshape(Cout, 1), b1.reshape(Cout, 1)
    g2_, b2_ = g2.reshape(Cout, 1), b2.reshape(Cout, 1)

    kernel = functools.partial(_residual_block_kernel, H=H, W=W, WP=WP, L=L, LP=LP)

    # Cost hint for XLA scheduling of the surrounding pad/reshape/slice.
    flops = 2 * N * H * W * 9 * (C * Cout + Cout * Cout)
    bytes_accessed = (2 * N * C * H * W * x_nchw.dtype.itemsize
                      + (9 * Cout * (C + Cout) + 4 * Cout) * 4)
    cost = pl.CostEstimate(flops=flops, transcendentals=2 * N * Cout,
                           bytes_accessed=bytes_accessed)

    # VMEM budget: double-buffered in/out + scratch + f32 accumulator headroom.
    isz = jnp.dtype(compute_dtype).itemsize
    vmem_est = (2 * b_tile * C * EXT_P * isz
                + 2 * b_tile * Cout * LP * x_nchw.dtype.itemsize
                + Cout * EXT_P * isz
                + 2 * 9 * Cout * (C + Cout) * isz
                + 6 * Cout * LP * 4)
    vmem_limit = int(min(64 << 20, max(32 << 20, 2 * vmem_est)))  # cap at v7x's 64 MiB

    out_ext = pl.pallas_call(
        kernel,
        out_shape=jax.ShapeDtypeStruct((N, Cout, LP), x_nchw.dtype),
        grid_spec=pltpu.PrefetchScalarGridSpec(
            num_scalar_prefetch=0,
            grid=(N // b_tile,),
            in_specs=[
                pl.BlockSpec((b_tile, C, EXT_P), lambda n: (n, 0, 0)),
                pl.BlockSpec((9, Cout, C), lambda n: (0, 0, 0)),
                pl.BlockSpec((Cout, 1), lambda n: (0, 0)),
                pl.BlockSpec((Cout, 1), lambda n: (0, 0)),
                pl.BlockSpec((9, Cout, Cout), lambda n: (0, 0, 0)),
                pl.BlockSpec((Cout, 1), lambda n: (0, 0)),
                pl.BlockSpec((Cout, 1), lambda n: (0, 0)),
            ],
            out_specs=pl.BlockSpec((b_tile, Cout, LP), lambda n: (n, 0, 0)),
            scratch_shapes=[
                pltpu.VMEM((Cout, EXT_P), compute_dtype),   # zero-framed intermediate
            ],
        ),
        compiler_params=pltpu.CompilerParams(
            dimension_semantics=("parallel",),
            vmem_limit_bytes=vmem_limit,
        ),
        cost_estimate=cost,
    )(xf, w1p, g1_, b1_, w2p, g2_, b2_)

    # Strip lane padding and the padded columns: (N, C, LP) -> (N, C, H, W).
    return out_ext[:, :, :L].reshape(N, Cout, H, WP)[:, :, :, 1:W + 1]


# ---------------- pure-JAX reference (for correctness check) ----------------
def _instance_norm_ref(y, g, b):
    mean = jnp.mean(y, axis=(2, 3), keepdims=True)
    var = jnp.mean((y - mean) ** 2, axis=(2, 3), keepdims=True)
    yn = (y - mean) / jnp.sqrt(var + EPS)
    return yn * g.reshape(1, -1, 1, 1) + b.reshape(1, -1, 1, 1)


def _ref_forward(x, w1, g1, b1, w2, g2, b2):
    dn = ('NCHW', 'OIHW', 'NCHW')
    y = lax.conv_general_dilated(x, w1, (1, 1), 'SAME', dimension_numbers=dn)
    y = jnp.maximum(_instance_norm_ref(y, g1, b1), 0.0)
    y = lax.conv_general_dilated(y, w2, (1, 1), 'SAME', dimension_numbers=dn)
    y = _instance_norm_ref(y, g2, b2)
    return x + y


if __name__ == "__main__":
    N, C, H, W = 2, 4, 16, 16          # batch=2, dim_in=dim_out=4, spatial=16
    key = jax.random.PRNGKey(0)
    kx, k1, k2, kg1, kb1, kg2, kb2 = jax.random.split(key, 7)

    x = jax.random.normal(kx, (N, C, H, W), jnp.float32)
    # deterministic synthetic parameters (shapes per the module's __init__)
    w1 = 0.1 * jax.random.normal(k1, (C, C, 3, 3), jnp.float32)   # conv1 OIHW
    w2 = 0.1 * jax.random.normal(k2, (C, C, 3, 3), jnp.float32)   # conv2 OIHW
    g1 = 1.0 + 0.1 * jax.random.normal(kg1, (C,), jnp.float32)    # IN1 gamma
    b1 = 0.1 * jax.random.normal(kb1, (C,), jnp.float32)          # IN1 beta
    g2 = 1.0 + 0.1 * jax.random.normal(kg2, (C,), jnp.float32)    # IN2 gamma
    b2 = 0.1 * jax.random.normal(kb2, (C,), jnp.float32)          # IN2 beta

    out = residual_block(x, w1, g1, b1, w2, g2, b2)
    jax.block_until_ready(out)

    ref = _ref_forward(x, w1, g1, b1, w2, g2, b2)
    assert out.shape == (N, C, H, W)
    assert jnp.allclose(out, ref, rtol=1e-4, atol=1e-4), "mismatch vs JAX reference"
    print("KERNEL_OK")
</pallas_src>

<mosaic_0001>
module attributes {stable_mosaic.version = 11 : i64} {
  func.func @_residual_block_kernel(%arg0: i32, %arg1: memref<1x4x456xf32, #tpu.memory_space<vmem>>, %arg2: memref<9x4x4xf32, #tpu.memory_space<vmem>>, %arg3: memref<4x1xf32, #tpu.memory_space<vmem>>, %arg4: memref<4x1xf32, #tpu.memory_space<vmem>>, %arg5: memref<9x4x4xf32, #tpu.memory_space<vmem>>, %arg6: memref<4x1xf32, #tpu.memory_space<vmem>>, %arg7: memref<4x1xf32, #tpu.memory_space<vmem>>, %arg8: memref<1x4x384xf32, #tpu.memory_space<vmem>>, %arg9: memref<4x456xf32, #tpu.memory_space<vmem>>) attributes {dimension_semantics = [#tpu.dimension_semantics<parallel>], iteration_bounds = array<i64: 2>, scalar_prefetch = 0 : i64, scratch_operands = 1 : i64, tpu.core_type = #tpu.core_type<tc>, window_params = [{transform_indices = @transform_0, window_bounds = array<i64: 1, 4, 456>}, {pipeline_mode = #tpu.pipeline_mode<synchronous>, transform_indices = @transform_1, window_bounds = array<i64: 9, 4, 4>}, {pipeline_mode = #tpu.pipeline_mode<synchronous>, transform_indices = @transform_2, window_bounds = array<i64: 4, 1>}, {pipeline_mode = #tpu.pipeline_mode<synchronous>, transform_indices = @transform_3, window_bounds = array<i64: 4, 1>}, {pipeline_mode = #tpu.pipeline_mode<synchronous>, transform_indices = @transform_4, window_bounds = array<i64: 9, 4, 4>}, {pipeline_mode = #tpu.pipeline_mode<synchronous>, transform_indices = @transform_5, window_bounds = array<i64: 4, 1>}, {pipeline_mode = #tpu.pipeline_mode<synchronous>, transform_indices = @transform_6, window_bounds = array<i64: 4, 1>}, {transform_indices = @transform_7, window_bounds = array<i64: 1, 4, 384>}]} {
    %0 = tpu.iota {dimensions = array<i32: 1>} : vector<1x384xi32>
    %c18_i32 = arith.constant 18 : i32
    %c0_i32 = arith.constant 0 : i32
    %1 = arith.cmpi eq, %c18_i32, %c0_i32 : i32
    %c1_i32 = arith.constant 1 : i32
    %2 = arith.select %1, %c1_i32, %c18_i32 : i32
    %3 = vector.broadcast %2 : i32 to vector<1x384xi32>
    %4 = arith.remsi %0, %3 : vector<1x384xi32>
    %c0_i32_0 = arith.constant 0 : i32
    %5 = vector.broadcast %c0_i32_0 : i32 to vector<1x384xi32>
    %6 = arith.cmpi ne, %4, %5 : vector<1x384xi32>
    %c0_i32_1 = arith.constant 0 : i32
    %7 = vector.broadcast %c0_i32_1 : i32 to vector<1x384xi32>
    %8 = arith.cmpi slt, %4, %7 : vector<1x384xi32>
    %c0_i32_2 = arith.constant 0 : i32
    %9 = arith.cmpi slt, %2, %c0_i32_2 : i32
    %10 = vector.broadcast %9 : i1 to vector<1x384xi1>
    %11 = vector.broadcast %10 : vector<1x384xi1> to vector<1x384xi1>
    %12 = arith.xori %8, %11 : vector<1x384xi1>
    %13 = arith.andi %12, %6 : vector<1x384xi1>
    %14 = vector.broadcast %2 : i32 to vector<1x384xi32>
    %15 = arith.addi %4, %14 : vector<1x384xi32>
    %16 = arith.select %13, %15, %4 : vector<1x384xi1>, vector<1x384xi32>
    %c1_i32_3 = arith.constant 1 : i32
    %17 = vector.broadcast %c1_i32_3 : i32 to vector<1x384xi32>
    %18 = arith.cmpi sge, %16, %17 : vector<1x384xi32>
    %c16_i32 = arith.constant 16 : i32
    %19 = vector.broadcast %c16_i32 : i32 to vector<1x384xi32>
    %20 = arith.cmpi sle, %16, %19 : vector<1x384xi32>
    %21 = arith.andi %18, %20 : vector<1x384xi1>
    %c288_i32 = arith.constant 288 : i32
    %22 = vector.broadcast %c288_i32 : i32 to vector<1x384xi32>
    %23 = arith.cmpi slt, %0, %22 : vector<1x384xi32>
    %24 = arith.andi %21, %23 : vector<1x384xi1>
    %c0 = arith.constant 0 : index
    %c0_4 = arith.constant 0 : index
    %25 = vector.load %arg3[%c0, %c0_4] : memref<4x1xf32, #tpu.memory_space<vmem>>, vector<4x1xf32>
    %c0_5 = arith.constant 0 : index
    %c0_6 = arith.constant 0 : index
    %26 = vector.load %arg4[%c0_5, %c0_6] : memref<4x1xf32, #tpu.memory_space<vmem>>, vector<4x1xf32>
    %c0_7 = arith.constant 0 : index
    %c0_8 = arith.constant 0 : index
    %27 = vector.load %arg6[%c0_7, %c0_8] : memref<4x1xf32, #tpu.memory_space<vmem>>, vector<4x1xf32>
    %c0_9 = arith.constant 0 : index
    %c0_10 = arith.constant 0 : index
    %28 = vector.load %arg7[%c0_9, %c0_10] : memref<4x1xf32, #tpu.memory_space<vmem>>, vector<4x1xf32>
    %cst = arith.constant 0.000000e+00 : f32
    %29 = vector.broadcast %cst : f32 to vector<4x36xf32>
    %c0_11 = arith.constant 0 : index
    %c0_12 = arith.constant 0 : index
    %30 = vector.load %arg9[%c0_11, %c0_12] : memref<4x456xf32, #tpu.memory_space<vmem>>, vector<4x36xf32>
    tpu.vector_store %arg9[%c0_11, %c0_12], %29 {strides = array<i32>} : memref<4x456xf32, #tpu.memory_space<vmem>>, vector<4x36xf32>,
    %cst_13 = arith.constant 0.000000e+00 : f32
    %31 = vector.broadcast %cst_13 : f32 to vector<4x36xf32>
    %c0_14 = arith.constant 0 : index
    %c420 = arith.constant 420 : index
    %32 = vector.load %arg9[%c0_14, %c420] : memref<4x456xf32, #tpu.memory_space<vmem>>, vector<4x36xf32>
    tpu.vector_store %arg9[%c0_14, %c420], %31 {strides = array<i32>} : memref<4x456xf32, #tpu.memory_space<vmem>>, vector<4x36xf32>,
    %cst_15 = arith.constant 0.000000e+00 : f32
    %33 = vector.broadcast %cst_15 : f32 to vector<4x384xf32>
    %c0_16 = arith.constant 0 : index
    %c0_17 = arith.constant 0 : index
    %c0_18 = arith.constant 0 : index
    %34 = vector.load %arg2[%c0_16, %c0_17, %c0_18] : memref<9x4x4xf32, #tpu.memory_space<vmem>>, vector<1x4x4xf32>
    %35 = vector.shape_cast %34 : vector<1x4x4xf32> to vector<4x4xf32>
    %c0_19 = arith.constant 0 : index
    %c0_20 = arith.constant 0 : index
    %c17 = arith.constant 17 : index
    %36 = vector.load %arg1[%c0_19, %c0_20, %c17] : memref<1x4x456xf32, #tpu.memory_space<vmem>>, vector<1x4x384xf32>
    %37 = vector.shape_cast %36 : vector<1x4x384xf32> to vector<4x384xf32>
    %cst_21 = arith.constant dense<0.000000e+00> : vector<4x384xf32>
    %38 = tpu.matmul %35, %37, %cst_21 {dimension_numbers = #tpu.dot_dimension_numbers<[1], [0], [0], [1], [0, 0, 1, 1], [], []>} : vector<4x4xf32>, vector<4x384xf32>, vector<4x384xf32> -> vector<4x384xf32>
    %39 = arith.addf %33, %38 : vector<4x384xf32>
    %c1 = arith.constant 1 : index
    %c0_22 = arith.constant 0 : index
    %c0_23 = arith.constant 0 : index
    %40 = vector.load %arg2[%c1, %c0_22, %c0_23] : memref<9x4x4xf32, #tpu.memory_space<vmem>>, vector<1x4x4xf32>
    %41 = vector.shape_cast %40 : vector<1x4x4xf32> to vector<4x4xf32>
    %c0_24 = arith.constant 0 : index
    %c0_25 = arith.constant 0 : index
    %c18 = arith.constant 18 : index
    %42 = vector.load %arg1[%c0_24, %c0_25, %c18] : memref<1x4x456xf32, #tpu.memory_space<vmem>>, vector<1x4x384xf32>
    %43 = vector.shape_cast %42 : vector<1x4x384xf32> to vector<4x384xf32>
    %cst_26 = arith.constant dense<0.000000e+00> : vector<4x384xf32>
    %44 = tpu.matmul %41, %43, %cst_26 {dimension_numbers = #tpu.dot_dimension_numbers<[1], [0], [0], [1], [0, 0, 1, 1], [], []>} : vector<4x4xf32>, vector<4x384xf32>, vector<4x384xf32> -> vector<4x384xf32>
    %45 = arith.addf %39, %44 : vector<4x384xf32>
    %c2 = arith.constant 2 : index
    %c0_27 = arith.constant 0 : index
    %c0_28 = arith.constant 0 : index
    %46 = vector.load %arg2[%c2, %c0_27, %c0_28] : memref<9x4x4xf32, #tpu.memory_space<vmem>>, vector<1x4x4xf32>
    %47 = vector.shape_cast %46 : vector<1x4x4xf32> to vector<4x4xf32>
    %c0_29 = arith.constant 0 : index
    %c0_30 = arith.constant 0 : index
    %c19 = arith.constant 19 : index
    %48 = vector.load %arg1[%c0_29, %c0_30, %c19] : memref<1x4x456xf32, #tpu.memory_space<vmem>>, vector<1x4x384xf32>
    %49 = vector.shape_cast %48 : vector<1x4x384xf32> to vector<4x384xf32>
    %cst_31 = arith.constant dense<0.000000e+00> : vector<4x384xf32>
    %50 = tpu.matmul %47, %49, %cst_31 {dimension_numbers = #tpu.dot_dimension_numbers<[1], [0], [0], [1], [0, 0, 1, 1], [], []>} : vector<4x4xf32>, vector<4x384xf32>, vector<4x384xf32> -> vector<4x384xf32>
    %51 = arith.addf %45, %50 : vector<4x384xf32>
    %c3 = arith.constant 3 : index
    %c0_32 = arith.constant 0 : index
    %c0_33 = arith.constant 0 : index
    %52 = vector.load %arg2[%c3, %c0_32, %c0_33] : memref<9x4x4xf32, #tpu.memory_space<vmem>>, vector<1x4x4xf32>
    %53 = vector.shape_cast %52 : vector<1x4x4xf32> to vector<4x4xf32>
    %c0_34 = arith.constant 0 : index
    %c0_35 = arith.constant 0 : index
    %c35 = arith.constant 35 : index
    %54 = vector.load %arg1[%c0_34, %c0_35, %c35] : memref<1x4x456xf32, #tpu.memory_space<vmem>>, vector<1x4x384xf32>
    %55 = vector.shape_cast %54 : vector<1x4x384xf32> to vector<4x384xf32>
    %cst_36 = arith.constant dense<0.000000e+00> : vector<4x384xf32>
    %56 = tpu.matmul %53, %55, %cst_36 {dimension_numbers = #tpu.dot_dimension_numbers<[1], [0], [0], [1], [0, 0, 1, 1], [], []>} : vector<4x4xf32>, vector<4x384xf32>, vector<4x384xf32> -> vector<4x384xf32>
    %57 = arith.addf %51, %56 : vector<4x384xf32>
    %c4 = arith.constant 4 : index
    %c0_37 = arith.constant 0 : index
    %c0_38 = arith.constant 0 : index
    %58 = vector.load %arg2[%c4, %c0_37, %c0_38] : memref<9x4x4xf32, #tpu.memory_space<vmem>>, vector<1x4x4xf32>
    %59 = vector.shape_cast %58 : vector<1x4x4xf32> to vector<4x4xf32>
    %c0_39 = arith.constant 0 : index
    %c0_40 = arith.constant 0 : index
    %c36 = arith.constant 36 : index
    %60 = vector.load %arg1[%c0_39, %c0_40, %c36] : memref<1x4x456xf32, #tpu.memory_space<vmem>>, vector<1x4x384xf32>
    %61 = vector.shape_cast %60 : vector<1x4x384xf32> to vector<4x384xf32>
    %cst_41 = arith.constant dense<0.000000e+00> : vector<4x384xf32>
    %62 = tpu.matmul %59, %61, %cst_41 {dimension_numbers = #tpu.dot_dimension_numbers<[1], [0], [0], [1], [0, 0, 1, 1], [], []>} : vector<4x4xf32>, vector<4x384xf32>, vector<4x384xf32> -> vector<4x384xf32>
    %63 = arith.addf %57, %62 : vector<4x384xf32>
    %c5 = arith.constant 5 : index
    %c0_42 = arith.constant 0 : index
    %c0_43 = arith.constant 0 : index
    %64 = vector.load %arg2[%c5, %c0_42, %c0_43] : memref<9x4x4xf32, #tpu.memory_space<vmem>>, vector<1x4x4xf32>
    %65 = vector.shape_cast %64 : vector<1x4x4xf32> to vector<4x4xf32>
    %c0_44 = arith.constant 0 : index
    %c0_45 = arith.constant 0 : index
    %c37 = arith.constant 37 : index
    %66 = vector.load %arg1[%c0_44, %c0_45, %c37] : memref<1x4x456xf32, #tpu.memory_space<vmem>>, vector<1x4x384xf32>
    %67 = vector.shape_cast %66 : vector<1x4x384xf32> to vector<4x384xf32>
    %cst_46 = arith.constant dense<0.000000e+00> : vector<4x384xf32>
    %68 = tpu.matmul %65, %67, %cst_46 {dimension_numbers = #tpu.dot_dimension_numbers<[1], [0], [0], [1], [0, 0, 1, 1], [], []>} : vector<4x4xf32>, vector<4x384xf32>, vector<4x384xf32> -> vector<4x384xf32>
    %69 = arith.addf %63, %68 : vector<4x384xf32>
    %c6 = arith.constant 6 : index
    %c0_47 = arith.constant 0 : index
    %c0_48 = arith.constant 0 : index
    %70 = vector.load %arg2[%c6, %c0_47, %c0_48] : memref<9x4x4xf32, #tpu.memory_space<vmem>>, vector<1x4x4xf32>
    %71 = vector.shape_cast %70 : vector<1x4x4xf32> to vector<4x4xf32>
    %c0_49 = arith.constant 0 : index
    %c0_50 = arith.constant 0 : index
    %c53 = arith.constant 53 : index
    %72 = vector.load %arg1[%c0_49, %c0_50, %c53] : memref<1x4x456xf32, #tpu.memory_space<vmem>>, vector<1x4x384xf32>
    %73 = vector.shape_cast %72 : vector<1x4x384xf32> to vector<4x384xf32>
    %cst_51 = arith.constant dense<0.000000e+00> : vector<4x384xf32>
    %74 = tpu.matmul %71, %73, %cst_51 {dimension_numbers = #tpu.dot_dimension_numbers<[1], [0], [0], [1], [0, 0, 1, 1], [], []>} : vector<4x4xf32>, vector<4x384xf32>, vector<4x384xf32> -> vector<4x384xf32>
    %75 = arith.addf %69, %74 : vector<4x384xf32>
    %c7 = arith.constant 7 : index
    %c0_52 = arith.constant 0 : index
    %c0_53 = arith.constant 0 : index
    %76 = vector.load %arg2[%c7, %c0_52, %c0_53] : memref<9x4x4xf32, #tpu.memory_space<vmem>>, vector<1x4x4xf32>
    %77 = vector.shape_cast %76 : vector<1x4x4xf32> to vector<4x4xf32>
    %c0_54 = arith.constant 0 : index
    %c0_55 = arith.constant 0 : index
    %c54 = arith.constant 54 : index
    %78 = vector.load %arg1[%c0_54, %c0_55, %c54] : memref<1x4x456xf32, #tpu.memory_space<vmem>>, vector<1x4x384xf32>
    %79 = vector.shape_cast %78 : vector<1x4x384xf32> to vector<4x384xf32>
    %cst_56 = arith.constant dense<0.000000e+00> : vector<4x384xf32>
    %80 = tpu.matmul %77, %79, %cst_56 {dimension_numbers = #tpu.dot_dimension_numbers<[1], [0], [0], [1], [0, 0, 1, 1], [], []>} : vector<4x4xf32>, vector<4x384xf32>, vector<4x384xf32> -> vector<4x384xf32>
    %81 = arith.addf %75, %80 : vector<4x384xf32>
    %c8 = arith.constant 8 : index
    %c0_57 = arith.constant 0 : index
    %c0_58 = arith.constant 0 : index
    %82 = vector.load %arg2[%c8, %c0_57, %c0_58] : memref<9x4x4xf32, #tpu.memory_space<vmem>>, vector<1x4x4xf32>
    %83 = vector.shape_cast %82 : vector<1x4x4xf32> to vector<4x4xf32>
    %c0_59 = arith.constant 0 : index
    %c0_60 = arith.constant 0 : index
    %c55 = arith.constant 55 : index
    %84 = vector.load %arg1[%c0_59, %c0_60, %c55] : memref<1x4x456xf32, #tpu.memory_space<vmem>>, vector<1x4x384xf32>
    %85 = vector.shape_cast %84 : vector<1x4x384xf32> to vector<4x384xf32>
    %cst_61 = arith.constant dense<0.000000e+00> : vector<4x384xf32>
    %86 = tpu.matmul %83, %85, %cst_61 {dimension_numbers = #tpu.dot_dimension_numbers<[1], [0], [0], [1], [0, 0, 1, 1], [], []>} : vector<4x4xf32>, vector<4x384xf32>, vector<4x384xf32> -> vector<4x384xf32>
    %87 = arith.addf %81, %86 : vector<4x384xf32>
    %cst_62 = arith.constant 0.000000e+00 : f32
    %88 = vector.shape_cast %24 : vector<1x384xi1> to vector<1x384xi1>
    %89 = vector.broadcast %88 : vector<1x384xi1> to vector<4x384xi1>
    %90 = vector.broadcast %cst_62 : f32 to vector<4x384xf32>
    %91 = arith.select %89, %87, %90 : vector<4x384xi1>, vector<4x384xf32>
    %cst_63 = arith.constant dense<0.000000e+00> : vector<4xf32>
    %92 = vector.multi_reduction <add>, %91, %cst_63 [1] : vector<4x384xf32> to vector<4xf32>
    %93 = vector.shape_cast %92 : vector<4xf32> to vector<4x1xf32>
    %cst_64 = arith.constant 3.906250e-03 : f32
    %94 = vector.broadcast %cst_64 : f32 to vector<4x1xf32>
    %95 = arith.mulf %93, %94 : vector<4x1xf32>
    %96 = arith.mulf %91, %87 : vector<4x384xf32>
    %cst_65 = arith.constant dense<0.000000e+00> : vector<4xf32>
    %97 = vector.multi_reduction <add>, %96, %cst_65 [1] : vector<4x384xf32> to vector<4xf32>
    %98 = vector.shape_cast %97 : vector<4xf32> to vector<4x1xf32>
    %cst_66 = arith.constant 3.906250e-03 : f32
    %99 = vector.broadcast %cst_66 : f32 to vector<4x1xf32>
    %100 = arith.mulf %98, %99 : vector<4x1xf32>
    %101 = arith.mulf %95, %95 : vector<4x1xf32>
    %102 = arith.subf %100, %101 : vector<4x1xf32>
    %cst_67 = arith.constant 0.000000e+00 : f32
    %103 = vector.broadcast %cst_67 : f32 to vector<4x1xf32>
    %104 = arith.maximumf %102, %103 : vector<4x1xf32>
    %cst_68 = arith.constant 9.99999974E-6 : f32
    %105 = vector.broadcast %cst_68 : f32 to vector<4x1xf32>
    %106 = arith.addf %104, %105 : vector<4x1xf32>
    %107 = math.rsqrt %106 : vector<4x1xf32>
    %108 = arith.mulf %25, %107 : vector<4x1xf32>
    %109 = arith.mulf %95, %108 : vector<4x1xf32>
    %110 = arith.subf %26, %109 : vector<4x1xf32>
    %111 = vector.broadcast %108 : vector<4x1xf32> to vector<4x384xf32>
    %112 = arith.mulf %87, %111 : vector<4x384xf32>
    %113 = vector.broadcast %110 : vector<4x1xf32> to vector<4x384xf32>
    %114 = arith.addf %112, %113 : vector<4x384xf32>
    %cst_69 = arith.constant 0.000000e+00 : f32
    %115 = vector.broadcast %cst_69 : f32 to vector<4x384xf32>
    %116 = arith.maximumf %114, %115 : vector<4x384xf32>
    %cst_70 = arith.constant 0.000000e+00 : f32
    %117 = vector.shape_cast %24 : vector<1x384xi1> to vector<1x384xi1>
    %118 = vector.broadcast %117 : vector<1x384xi1> to vector<4x384xi1>
    %119 = vector.broadcast %cst_70 : f32 to vector<4x384xf32>
    %120 = arith.select %118, %116, %119 : vector<4x384xi1>, vector<4x384xf32>
    %c0_71 = arith.constant 0 : index
    %c36_72 = arith.constant 36 : index
    %121 = vector.load %arg9[%c0_71, %c36_72] : memref<4x456xf32, #tpu.memory_space<vmem>>, vector<4x384xf32>
    tpu.vector_store %arg9[%c0_71, %c36_72], %120 {strides = array<i32>} : memref<4x456xf32, #tpu.memory_space<vmem>>, vector<4x384xf32>,
    %cst_73 = arith.constant 0.000000e+00 : f32
    %122 = vector.broadcast %cst_73 : f32 to vector<4x384xf32>
    %c0_74 = arith.constant 0 : index
    %c0_75 = arith.constant 0 : index
    %c0_76 = arith.constant 0 : index
    %123 = vector.load %arg5[%c0_74, %c0_75, %c0_76] : memref<9x4x4xf32, #tpu.memory_space<vmem>>, vector<1x4x4xf32>
    %124 = vector.shape_cast %123 : vector<1x4x4xf32> to vector<4x4xf32>
    %c0_77 = arith.constant 0 : index
    %c17_78 = arith.constant 17 : index
    %125 = vector.load %arg9[%c0_77, %c17_78] : memref<4x456xf32, #tpu.memory_space<vmem>>, vector<4x384xf32>
    %cst_79 = arith.constant dense<0.000000e+00> : vector<4x384xf32>
    %126 = tpu.matmul %124, %125, %cst_79 {dimension_numbers = #tpu.dot_dimension_numbers<[1], [0], [0], [1], [0, 0, 1, 1], [], []>} : vector<4x4xf32>, vector<4x384xf32>, vector<4x384xf32> -> vector<4x384xf32>
    %127 = arith.addf %122, %126 : vector<4x384xf32>
    %c1_80 = arith.constant 1 : index
    %c0_81 = arith.constant 0 : index
    %c0_82 = arith.constant 0 : index
    %128 = vector.load %arg5[%c1_80, %c0_81, %c0_82] : memref<9x4x4xf32, #tpu.memory_space<vmem>>, vector<1x4x4xf32>
    %129 = vector.shape_cast %128 : vector<1x4x4xf32> to vector<4x4xf32>
    %c0_83 = arith.constant 0 : index
    %c18_84 = arith.constant 18 : index
    %130 = vector.load %arg9[%c0_83, %c18_84] : memref<4x456xf32, #tpu.memory_space<vmem>>, vector<4x384xf32>
    %cst_85 = arith.constant dense<0.000000e+00> : vector<4x384xf32>
    %131 = tpu.matmul %129, %130, %cst_85 {dimension_numbers = #tpu.dot_dimension_numbers<[1], [0], [0], [1], [0, 0, 1, 1], [], []>} : vector<4x4xf32>, vector<4x384xf32>, vector<4x384xf32> -> vector<4x384xf32>
    %132 = arith.addf %127, %131 : vector<4x384xf32>
    %c2_86 = arith.constant 2 : index
    %c0_87 = arith.constant 0 : index
    %c0_88 = arith.constant 0 : index
    %133 = vector.load %arg5[%c2_86, %c0_87, %c0_88] : memref<9x4x4xf32, #tpu.memory_space<vmem>>, vector<1x4x4xf32>
    %134 = vector.shape_cast %133 : vector<1x4x4xf32> to vector<4x4xf32>
    %c0_89 = arith.constant 0 : index
    %c19_90 = arith.constant 19 : index
    %135 = vector.load %arg9[%c0_89, %c19_90] : memref<4x456xf32, #tpu.memory_space<vmem>>, vector<4x384xf32>
    %cst_91 = arith.constant dense<0.000000e+00> : vector<4x384xf32>
    %136 = tpu.matmul %134, %135, %cst_91 {dimension_numbers = #tpu.dot_dimension_numbers<[1], [0], [0], [1], [0, 0, 1, 1], [], []>} : vector<4x4xf32>, vector<4x384xf32>, vector<4x384xf32> -> vector<4x384xf32>
    %137 = arith.addf %132, %136 : vector<4x384xf32>
    %c3_92 = arith.constant 3 : index
    %c0_93 = arith.constant 0 : index
    %c0_94 = arith.constant 0 : index
    %138 = vector.load %arg5[%c3_92, %c0_93, %c0_94] : memref<9x4x4xf32, #tpu.memory_space<vmem>>, vector<1x4x4xf32>
    %139 = vector.shape_cast %138 : vector<1x4x4xf32> to vector<4x4xf32>
    %c0_95 = arith.constant 0 : index
    %c35_96 = arith.constant 35 : index
    %140 = vector.load %arg9[%c0_95, %c35_96] : memref<4x456xf32, #tpu.memory_space<vmem>>, vector<4x384xf32>
    %cst_97 = arith.constant dense<0.000000e+00> : vector<4x384xf32>
    %141 = tpu.matmul %139, %140, %cst_97 {dimension_numbers = #tpu.dot_dimension_numbers<[1], [0], [0], [1], [0, 0, 1, 1], [], []>} : vector<4x4xf32>, vector<4x384xf32>, vector<4x384xf32> -> vector<4x384xf32>
    %142 = arith.addf %137, %141 : vector<4x384xf32>
    %c4_98 = arith.constant 4 : index
    %c0_99 = arith.constant 0 : index
    %c0_100 = arith.constant 0 : index
    %143 = vector.load %arg5[%c4_98, %c0_99, %c0_100] : memref<9x4x4xf32, #tpu.memory_space<vmem>>, vector<1x4x4xf32>
    %144 = vector.shape_cast %143 : vector<1x4x4xf32> to vector<4x4xf32>
    %c0_101 = arith.constant 0 : index
    %c36_102 = arith.constant 36 : index
    %145 = vector.load %arg9[%c0_101, %c36_102] : memref<4x456xf32, #tpu.memory_space<vmem>>, vector<4x384xf32>
    %cst_103 = arith.constant dense<0.000000e+00> : vector<4x384xf32>
    %146 = tpu.matmul %144, %145, %cst_103 {dimension_numbers = #tpu.dot_dimension_numbers<[1], [0], [0], [1], [0, 0, 1, 1], [], []>} : vector<4x4xf32>, vector<4x384xf32>, vector<4x384xf32> -> vector<4x384xf32>
    %147 = arith.addf %142, %146 : vector<4x384xf32>
    %c5_104 = arith.constant 5 : index
    %c0_105 = arith.constant 0 : index
    %c0_106 = arith.constant 0 : index
    %148 = vector.load %arg5[%c5_104, %c0_105, %c0_106] : memref<9x4x4xf32, #tpu.memory_space<vmem>>, vector<1x4x4xf32>
    %149 = vector.shape_cast %148 : vector<1x4x4xf32> to vector<4x4xf32>
    %c0_107 = arith.constant 0 : index
    %c37_108 = arith.constant 37 : index
    %150 = vector.load %arg9[%c0_107, %c37_108] : memref<4x456xf32, #tpu.memory_space<vmem>>, vector<4x384xf32>
    %cst_109 = arith.constant dense<0.000000e+00> : vector<4x384xf32>
    %151 = tpu.matmul %149, %150, %cst_109 {dimension_numbers = #tpu.dot_dimension_numbers<[1], [0], [0], [1], [0, 0, 1, 1], [], []>} : vector<4x4xf32>, vector<4x384xf32>, vector<4x384xf32> -> vector<4x384xf32>
    %152 = arith.addf %147, %151 : vector<4x384xf32>
    %c6_110 = arith.constant 6 : index
    %c0_111 = arith.constant 0 : index
    %c0_112 = arith.constant 0 : index
    %153 = vector.load %arg5[%c6_110, %c0_111, %c0_112] : memref<9x4x4xf32, #tpu.memory_space<vmem>>, vector<1x4x4xf32>
    %154 = vector.shape_cast %153 : vector<1x4x4xf32> to vector<4x4xf32>
    %c0_113 = arith.constant 0 : index
    %c53_114 = arith.constant 53 : index
    %155 = vector.load %arg9[%c0_113, %c53_114] : memref<4x456xf32, #tpu.memory_space<vmem>>, vector<4x384xf32>
    %cst_115 = arith.constant dense<0.000000e+00> : vector<4x384xf32>
    %156 = tpu.matmul %154, %155, %cst_115 {dimension_numbers = #tpu.dot_dimension_numbers<[1], [0], [0], [1], [0, 0, 1, 1], [], []>} : vector<4x4xf32>, vector<4x384xf32>, vector<4x384xf32> -> vector<4x384xf32>
    %157 = arith.addf %152, %156 : vector<4x384xf32>
    %c7_116 = arith.constant 7 : index
    %c0_117 = arith.constant 0 : index
    %c0_118 = arith.constant 0 : index
    %158 = vector.load %arg5[%c7_116, %c0_117, %c0_118] : memref<9x4x4xf32, #tpu.memory_space<vmem>>, vector<1x4x4xf32>
    %159 = vector.shape_cast %158 : vector<1x4x4xf32> to vector<4x4xf32>
    %c0_119 = arith.constant 0 : index
    %c54_120 = arith.constant 54 : index
    %160 = vector.load %arg9[%c0_119, %c54_120] : memref<4x456xf32, #tpu.memory_space<vmem>>, vector<4x384xf32>
    %cst_121 = arith.constant dense<0.000000e+00> : vector<4x384xf32>
    %161 = tpu.matmul %159, %160, %cst_121 {dimension_numbers = #tpu.dot_dimension_numbers<[1], [0], [0], [1], [0, 0, 1, 1], [], []>} : vector<4x4xf32>, vector<4x384xf32>, vector<4x384xf32> -> vector<4x384xf32>
    %162 = arith.addf %157, %161 : vector<4x384xf32>
    %c8_122 = arith.constant 8 : index
    %c0_123 = arith.constant 0 : index
    %c0_124 = arith.constant 0 : index
    %163 = vector.load %arg5[%c8_122, %c0_123, %c0_124] : memref<9x4x4xf32, #tpu.memory_space<vmem>>, vector<1x4x4xf32>
    %164 = vector.shape_cast %163 : vector<1x4x4xf32> to vector<4x4xf32>
    %c0_125 = arith.constant 0 : index
    %c55_126 = arith.constant 55 : index
    %165 = vector.load %arg9[%c0_125, %c55_126] : memref<4x456xf32, #tpu.memory_space<vmem>>, vector<4x384xf32>
    %cst_127 = arith.constant dense<0.000000e+00> : vector<4x384xf32>
    %166 = tpu.matmul %164, %165, %cst_127 {dimension_numbers = #tpu.dot_dimension_numbers<[1], [0], [0], [1], [0, 0, 1, 1], [], []>} : vector<4x4xf32>, vector<4x384xf32>, vector<4x384xf32> -> vector<4x384xf32>
    %167 = arith.addf %162, %166 : vector<4x384xf32>
    %cst_128 = arith.constant 0.000000e+00 : f32
    %168 = vector.shape_cast %24 : vector<1x384xi1> to vector<1x384xi1>
    %169 = vector.broadcast %168 : vector<1x384xi1> to vector<4x384xi1>
    %170 = vector.broadcast %cst_128 : f32 to vector<4x384xf32>
    %171 = arith.select %169, %167, %170 : vector<4x384xi1>, vector<4x384xf32>
    %cst_129 = arith.constant dense<0.000000e+00> : vector<4xf32>
    %172 = vector.multi_reduction <add>, %171, %cst_129 [1] : vector<4x384xf32> to vector<4xf32>
    %173 = vector.shape_cast %172 : vector<4xf32> to vector<4x1xf32>
    %cst_130 = arith.constant 3.906250e-03 : f32
    %174 = vector.broadcast %cst_130 : f32 to vector<4x1xf32>
    %175 = arith.mulf %173, %174 : vector<4x1xf32>
    %176 = arith.mulf %171, %167 : vector<4x384xf32>
    %cst_131 = arith.constant dense<0.000000e+00> : vector<4xf32>
    %177 = vector.multi_reduction <add>, %176, %cst_131 [1] : vector<4x384xf32> to vector<4xf32>
    %178 = vector.shape_cast %177 : vector<4xf32> to vector<4x1xf32>
    %cst_132 = arith.constant 3.906250e-03 : f32
    %179 = vector.broadcast %cst_132 : f32 to vector<4x1xf32>
    %180 = arith.mulf %178, %179 : vector<4x1xf32>
    %181 = arith.mulf %175, %175 : vector<4x1xf32>
    %182 = arith.subf %180, %181 : vector<4x1xf32>
    %cst_133 = arith.constant 0.000000e+00 : f32
    %183 = vector.broadcast %cst_133 : f32 to vector<4x1xf32>
    %184 = arith.maximumf %182, %183 : vector<4x1xf32>
    %cst_134 = arith.constant 9.99999974E-6 : f32
    %185 = vector.broadcast %cst_134 : f32 to vector<4x1xf32>
    %186 = arith.addf %184, %185 : vector<4x1xf32>
    %187 = math.rsqrt %186 : vector<4x1xf32>
    %188 = arith.mulf %27, %187 : vector<4x1xf32>
    %189 = arith.mulf %175, %188 : vector<4x1xf32>
    %190 = arith.subf %28, %189 : vector<4x1xf32>
    %191 = vector.broadcast %188 : vector<4x1xf32> to vector<4x384xf32>
    %192 = arith.mulf %167, %191 : vector<4x384xf32>
    %193 = vector.broadcast %190 : vector<4x1xf32> to vector<4x384xf32>
    %194 = arith.addf %192, %193 : vector<4x384xf32>
    %c0_135 = arith.constant 0 : index
    %c0_136 = arith.constant 0 : index
    %c36_137 = arith.constant 36 : index
    %195 = vector.load %arg1[%c0_135, %c0_136, %c36_137] : memref<1x4x456xf32, #tpu.memory_space<vmem>>, vector<1x4x384xf32>
    %196 = vector.shape_cast %195 : vector<1x4x384xf32> to vector<4x384xf32>
    %197 = arith.addf %196, %194 : vector<4x384xf32>
    %c0_138 = arith.constant 0 : index
    %c0_139 = arith.constant 0 : index
    %c0_140 = arith.constant 0 : index
    %198 = vector.load %arg8[%c0_138, %c0_139, %c0_140] : memref<1x4x384xf32, #tpu.memory_space<vmem>>, vector<1x4x384xf32>
    %199 = vector.shape_cast %198 : vector<1x4x384xf32> to vector<4x384xf32>
    %200 = vector.shape_cast %197 : vector<4x384xf32> to vector<1x4x384xf32>
    tpu.vector_store %arg8[%c0_138, %c0_139, %c0_140], %200 {strides = array<i32>} : memref<1x4x384xf32, #tpu.memory_space<vmem>>, vector<1x4x384xf32>,
    return
  }
  func.func @transform_0(%arg0: i32) -> (i32, i32, i32) {
    %c0_i32 = arith.constant 0 : i32
    %c0_i32_0 = arith.constant 0 : i32
    %c0_i32_1 = arith.constant 0 : i32
    return %arg0, %c0_i32, %c0_i32_0 : i32, i32, i32
  }
  func.func @transform_1(%arg0: i32) -> (i32, i32, i32) {
    %c0_i32 = arith.constant 0 : i32
    %c0_i32_0 = arith.constant 0 : i32
    %c0_i32_1 = arith.constant 0 : i32
    %c0_i32_2 = arith.constant 0 : i32
    return %c0_i32, %c0_i32_0, %c0_i32_1 : i32, i32, i32
  }
  func.func @transform_2(%arg0: i32) -> (i32, i32) {
    %c0_i32 = arith.constant 0 : i32
    %c0_i32_0 = arith.constant 0 : i32
    %c0_i32_1 = arith.constant 0 : i32
    return %c0_i32, %c0_i32_0 : i32, i32
  }
  func.func @transform_3(%arg0: i32) -> (i32, i32) {
    %c0_i32 = arith.constant 0 : i32
    %c0_i32_0 = arith.constant 0 : i32
    %c0_i32_1 = arith.constant 0 : i32
    return %c0_i32, %c0_i32_0 : i32, i32
  }
  func.func @transform_4(%arg0: i32) -> (i32, i32, i32) {
    %c0_i32 = arith.constant 0 : i32
    %c0_i32_0 = arith.constant 0 : i32
    %c0_i32_1 = arith.constant 0 : i32
    %c0_i32_2 = arith.constant 0 : i32
    return %c0_i32, %c0_i32_0, %c0_i32_1 : i32, i32, i32
  }
  func.func @transform_5(%arg0: i32) -> (i32, i32) {
    %c0_i32 = arith.constant 0 : i32
    %c0_i32_0 = arith.constant 0 : i32
    %c0_i32_1 = arith.constant 0 : i32
    return %c0_i32, %c0_i32_0 : i32, i32
  }
  func.func @transform_6(%arg0: i32) -> (i32, i32) {
    %c0_i32 = arith.constant 0 : i32
    %c0_i32_0 = arith.constant 0 : i32
    %c0_i32_1 = arith.constant 0 : i32
    return %c0_i32, %c0_i32_0 : i32, i32
  }
  func.func @transform_7(%arg0: i32) -> (i32, i32, i32) {
    %c0_i32 = arith.constant 0 : i32
    %c0_i32_0 = arith.constant 0 : i32
    %c0_i32_1 = arith.constant 0 : i32
    return %arg0, %c0_i32, %c0_i32_0 : i32, i32, i32
  }
}

</mosaic_0001>

<bundles_post_ra>
// kernel: tpu_custom_call.1
= control target key start
LH: loop header
LB: loop body
LE: loop exit
PB: predicated region body
PF: predicated region fallthrough
CT: control target
= control target key end

     0   :  { %12 = vsyncpa [#allocation4], 0  ;;  %s4655_s0 = inlined_call_operand.vmem [shape: f32[2,4,456], index: 0, kind: input, shape index: {}]   ;;  %s4656_s1 = inlined_call_operand.vmem [shape: f32[9,4,4], index: 1, kind: input, shape index: {}]   ;;  %s4657_s2 = inlined_call_operand.vmem [shape: f32[4,1], index: 2, kind: input, shape index: {}]   ;;  %s4658_s3 = inlined_call_operand.vmem [shape: f32[4,1], index: 3, kind: input, shape index: {}]   ;;  %s4659_s4 = inlined_call_operand.vmem [shape: f32[9,4,4], index: 4, kind: input, shape index: {}]   ;;  %s4660_s5 = inlined_call_operand.vmem [shape: f32[4,1], index: 5, kind: input, shape index: {}]   ;;  %s4661_s6 = inlined_call_operand.vmem [shape: f32[4,1], index: 6, kind: input, shape index: {}]   ;;  %s4662_s7 = inlined_call_operand.hbm [shape: f32[2,4,384], index: 7, kind: output, shape index: {}]  }
   0x1   :  { %14 = vsyncpa [#allocation4 + $0x1], 0  ;;  %s4096_s24 = smov 0   ;;  %s4098_s25 = smov 0  }
   0x2   :  { %s4100_s26 = smov 0   ;;  %s4102_s27 = smov 0  }
   0x3 LB: > { %s4117_s28 = sadd.s32 4294967295, %s4040_s27   ;;  %s3668_s29 = sadd.s32 4294967294, %s4040_s27   ;;  %s4040_s27 = sphi %s4102_s27, %s4702_s27   ;;  %s4036_s26 = sphi %s4100_s26, %s4701_s26   ;;  %s4032_s25 = sphi %s4098_s25, %s4700_s25   ;;  %s4028_s24 = sphi %s4096_s24, %s4699_s24  }
   0x4   : > { %s4121_s30 = sadd.s32 1, %s4040_s27   ;;  %s179_s8 = sadd.s32 1, %s4036_s26 }
   0x5   : > { %s176_s9 = ssub.s32 %s4040_s27, %s4121_s30  ;;  %p189_p0 = scmp.ne.s32.totalorder %s4036_s26, %s4032_s25 }
   0x6   : > { %p177_p1 = scmp.eq.s32.totalorder %s176_s9, 0  ;;  %p190_p2 = scmp.eq.s32.totalorder %s4117_s28, 1 }
   0x7   : > { %p195_p3 = scmp.ne.s32.totalorder %s4032_s25, %s4028_s24  ;;  %p196_p4 = scmp.eq.s32.totalorder %s3668_s29, 1 }
   0x8   : > { %s4132_s10 = scalar_select %p177_p1, %s4036_s26, %s179_s8  }
   0x9   : > { %p4134_p5 = por %p190_p2, %p189_p0  ;;  %p4138_p6 = por %p196_p4, %p195_p3 }
   0xa   : > { %p3671_p7 = scmp.ge.s32.totalorder %s4040_s27, 1  ;;  %p240_p8 = scmp.lt.s32.totalorder %s4040_s27, 3 }
   0xc   : > { %p241_p9 = pnand %p3671_p7, %p240_p8 }
   0xd   : > { %p272_p10 = scmp.lt.s32.totalorder (!%p241_p9), %s4117_s28, 1  ;;  %s4043_s18 = smov (!%p241_p9), 110  }
   0xe   : > { %244 = sbr.rel (%p241_p9) target bundleno = 1779 (0x6f3), region = 48  ;;  %s4045_s19 = smov (!%p241_p9), 111  }
   0xf   : > { %s4046_s20 = smov (!%p241_p9), 109   ;;  %s4047_s21 = smov (!%p241_p9), 93  }
  0x10   : > { %s4048_s22 = smov (!%p241_p9), 92   ;;  %s4049_s23 = smov (!%p241_p9), 91  }
  0x11   : > { %s4050_s29 = smov (!%p241_p9), 75   ;;  %s4051_s8 = smov (!%p241_p9), 74  }
  0x12   : > { %s4052_s9 = smov (!%p241_p9), 73   ;;  %s4054_s15 = smov (!%p241_p9), 36  }
  0x13   : > { %s273_s13 = scalar_select %p272_p10, %s4117_s28, 1  ;;  %v4042_v0 = vmov 0.0   ;;  %vm4665_vm0 = vmmov 0   ;;  %vm369_vm1 = vcmask 900096   ;;  %vm377_vm2 = vcmask 1043456  }
  0x14   : > { %3820 = vmatprep.subr.mxu1 %v4042_v0  ;;  %448 = vmatprep.mubr.f32.mxu0 %v4042_v0  ;;  %vm533_vm3 = vcmask 908288   ;;  %v3674_v14 = vld [vmem:[%s4656_s1 + $0x4] sm:$0xf]  ;;  %vm373_vm4 = vcmask 31744   ;;  %v352_v19 = vld [vmem:[%s4656_s1] sm:$0xf] }
  0x15   : > { %s3783_s14 = sshll.u32 %s273_s13, 4  ;;  %3822 = vmatprep.mubr.msk.f32.mxu1 %vm4665_vm0, %v4042_v0  ;;  %vm703_vm5 = vcmask 891904   ;;  %v3685_v26 = vld [vmem:[%s4656_s1 + $0x8] sm:$0xf]  ;;  %vm4670_vm6 = vcmask 760832   ;;  %vm4669_vm7 = vcmask 752640  }
  0x16   : > { %s4151_s17 = scalar_lea.vmem %s4655_s0, %s3783_s14  ;;  %v3691_v34 = vld [vmem:[%s4656_s1 + $0xc] sm:$0xf]  ;;  %v3697_v42 = vld [vmem:[%s4656_s1 + $0x10] sm:$0xf]  ;;  %vm4668_vm8 = vcmask 744448   ;;  %vm4667_vm9 = vcmask 613376  }
  0x17   : > { %v354_v1 = vld [vmem:[%s4151_s17 + $0x8] sm:$0xff]  ;;  %v353_v2 = vld [vmem:[%s4151_s17] sm:$0xff]  ;;  %v3703_v50 = vld [vmem:[%s4656_s1 + $0x14] sm:$0xf]  ;;  %vm4664_vm10 = vcmask 605184   ;;  %vm4663_vm11 = vcmask 596992  }
  0x18   : > { %365 = vrot.lane.b32.xlu0 %v354_v1, %s4043_s18  ;;  %361 = vrot.lane.b32.xlu1 %v353_v2, %s4043_s18  ;;  %v359_v3 = vcombine.high %v353_v2, %v353_v2  ;;  %v360_v4 = vcombine.high %v354_v1, %v354_v1  ;;  %v3709_v58 = vld [vmem:[%s4656_s1 + $0x18] sm:$0xf] }
  0x1c   : > { %529 = vrot.lane.b32.xlu0 %v354_v1, %s4045_s19  ;;  %527 = vrot.lane.b32.xlu1 %v359_v3, %s4045_s19 }
  0x20   : > { %367 = vrot.lane.b32.xlu1 %v360_v4, %s4043_s18  ;;  %363 = vrot.lane.b32.xlu0 %v359_v3, %s4043_s18 }
  0x24   : > { %697 = vrot.lane.b32.xlu1 %v359_v3, %s4046_s20  ;;  %525 = vrot.lane.b32.xlu0 %v353_v2, %s4045_s19 }
  0x28   : > { %531 = vrot.lane.b32.xlu1 %v360_v4, %s4045_s19  ;;  %699 = vrot.lane.b32.xlu0 %v354_v1, %s4046_s20 }
  0x2c   : > { %870 = vrot.lane.b32.xlu1 %v359_v3, %s4047_s21  ;;  %695 = vrot.lane.b32.xlu0 %v353_v2, %s4046_s20 }
  0x30   : > { %701 = vrot.lane.b32.xlu1 %v360_v4, %s4046_s20  ;;  %872 = vrot.lane.b32.xlu0 %v354_v1, %s4047_s21 }
  0x34   : > { %1043 = vrot.lane.b32.xlu1 %v359_v3, %s4048_s22  ;;  %868 = vrot.lane.b32.xlu0 %v353_v2, %s4047_s21 }
  0x38   : > { %874 = vrot.lane.b32.xlu1 %v360_v4, %s4047_s21  ;;  %1045 = vrot.lane.b32.xlu0 %v354_v1, %s4048_s22 }
  0x3c   : > { %1216 = vrot.lane.b32.xlu1 %v359_v3, %s4049_s23  ;;  %1041 = vrot.lane.b32.xlu0 %v353_v2, %s4048_s22 }
  0x40   : > { %1047 = vrot.lane.b32.xlu1 %v360_v4, %s4048_s22  ;;  %1218 = vrot.lane.b32.xlu0 %v354_v1, %s4049_s23 }
  0x44   : > { %1389 = vrot.lane.b32.xlu1 %v359_v3, %s4050_s29  ;;  %1214 = vrot.lane.b32.xlu0 %v353_v2, %s4049_s23 }
  0x48   : > { %1220 = vrot.lane.b32.xlu1 %v360_v4, %s4049_s23  ;;  %1391 = vrot.lane.b32.xlu0 %v354_v1, %s4050_s29 }
  0x4c   : > { %1562 = vrot.lane.b32.xlu1 %v359_v3, %s4051_s8  ;;  %1387 = vrot.lane.b32.xlu0 %v353_v2, %s4050_s29 }
  0x50   : > { %1393 = vrot.lane.b32.xlu1 %v360_v4, %s4050_s29  ;;  %1564 = vrot.lane.b32.xlu0 %v354_v1, %s4051_s8 }
  0x54   : > { %1735 = vrot.lane.b32.xlu1 %v359_v3, %s4052_s9  ;;  %1560 = vrot.lane.b32.xlu0 %v353_v2, %s4051_s8  ;;  %v3715_v3 = vld [vmem:[%s4656_s1 + $0x1c] sm:$0xf] }
  0x58   : > { %1566 = vrot.lane.b32.xlu1 %v360_v4, %s4051_s8  ;;  %1737 = vrot.lane.b32.xlu0 %v354_v1, %s4052_s9 }
  0x5c   : > { %1739 = vrot.lane.b32.xlu1 %v360_v4, %s4052_s9  ;;  %1733 = vrot.lane.b32.xlu0 %v353_v2, %s4052_s9 }
  0x8a   : > { %v366_v5 = vpop.permute.xlu0 %365  ;;  %v362_v6 = vpop.permute.xlu1 %361 }
  0x8e   : > { %v530_v7 = vpop.permute.xlu0 %529  ;;  %v528_v8 = vpop.permute.xlu1 %527 }
  0x8f   : > { %v535_v15 = vsel %vm533_vm3, %v528_v8, %v530_v7 }
  0x92   : > { %v368_v9 = vpop.permute.xlu1 %367  ;;  %v364_v10 = vpop.permute.xlu0 %363 }
  0x93   : > { %v371_v11 = vsel %vm369_vm1, %v364_v10, %v366_v5  ;;  %v372_v12 = vsel %vm369_vm1, %v366_v5, %v368_v9  ;;  %v370_v13 = vsel %vm369_vm1, %v362_v6, %v364_v10 }
  0x94   : > { %3675 = vmatprep.subr.msk.mxu0 %vm377_vm2, %v371_v11  ;;  %3821 = vmatpush3.msk.msra.mxu1 %vm377_vm2, %v372_v12  ;;  %v3721_v11 = vld [vmem:[%s4656_s1 + $0x20] sm:$0xf] }
  0x95   : > { %3676 = vmatpush1.msk.msra.mxu0 %vm377_vm2, %v370_v13  ;;  %3825 = vmatprep.subr.mxu1 %v4042_v0 }
  0x96   : > { %v698_v16 = vpop.permute.xlu1 %697  ;;  %3680 = vmatprep.subr.msk.mxu0 %vm377_vm2, %v535_v15  ;;  %v526_v17 = vpop.permute.xlu0 %525  ;;  %3677 = vmatmul.mubr.msk.f32.vlgmr.msra.gmra.mxu0 %vm373_vm4, %v3674_v14 }
  0x97   : > { %v534_v18 = vsel %vm533_vm3, %v526_v17, %v528_v8  ;;  %3823 = vmatmul.mubr.msk.f32.vlgmr.msra.gmra.mxu1 %vm373_vm4, %v3674_v14  ;;  %610 = vmatprep.mubr.f32.mxu0 %v4042_v0 }
  0x98   : > { %3681 = vmatpush1.msk.msra.mxu0 %vm377_vm2, %v534_v18  ;;  %3827 = vmatprep.mubr.msk.f32.mxu1 %vm4665_vm0, %v4042_v0 }
  0x9a   : > { %v532_v20 = vpop.permute.xlu1 %531  ;;  %v700_v21 = vpop.permute.xlu0 %699  ;;  %3682 = vmatmul.mubr.msk.f32.vlgmr.msra.gmra.mxu0 %vm373_vm4, %v352_v19 }
  0x9b   : > { %v536_v22 = vsel %vm533_vm3, %v530_v7, %v532_v20  ;;  %v705_v23 = vsel %vm703_vm5, %v698_v16, %v700_v21  ;;  %780 = vmatprep.mubr.f32.mxu0 %v4042_v0 }
  0x9c   : > { %3826 = vmatpush3.msk.msra.mxu1 %vm377_vm2, %v536_v22  ;;  %3686 = vmatprep.subr.msk.mxu0 %vm377_vm2, %v705_v23 }
  0x9d   : > { %3830 = vmatprep.subr.mxu1 %v4042_v0  ;;  %3828 = vmatmul.mubr.msk.f32.vlgmr.msra.gmra.mxu1 %vm373_vm4, %v352_v19 }
  0x9e   : > { %v871_v24 = vpop.permute.xlu1 %870  ;;  %v696_v25 = vpop.permute.xlu0 %695  ;;  %3832 = vmatprep.mubr.msk.f32.mxu1 %vm4665_vm0, %v4042_v0 }
  0x9f   : > { %v704_v27 = vsel %vm703_vm5, %v696_v25, %v698_v16 }
  0xa0   : > { %3687 = vmatpush1.msk.msra.mxu0 %vm377_vm2, %v704_v27 }
  0xa1   : > { %3688 = vmatmul.mubr.msk.f32.vlgmr.msra.gmra.mxu0 %vm373_vm4, %v3685_v26 }
  0xa2   : > { %v702_v28 = vpop.permute.xlu1 %701  ;;  %v873_v29 = vpop.permute.xlu0 %872  ;;  %953 = vmatprep.mubr.f32.mxu0 %v4042_v0 }
  0xa3   : > { %v706_v30 = vsel %vm703_vm5, %v700_v21, %v702_v28  ;;  %v878_v31 = vsel %vm4670_vm6, %v871_v24, %v873_v29  ;;  %v277_v21 = vlaneseq }
  0xa4   : > { %3831 = vmatpush3.msk.msra.mxu1 %vm377_vm2, %v706_v30  ;;  %3692 = vmatprep.subr.msk.mxu0 %vm377_vm2, %v878_v31 }
  0xa5   : > { %3835 = vmatprep.subr.mxu1 %v4042_v0  ;;  %3833 = vmatmul.mubr.msk.f32.vlgmr.msra.gmra.mxu1 %vm373_vm4, %v3685_v26 }
  0xa6   : > { %v1044_v32 = vpop.permute.xlu1 %1043  ;;  %v869_v33 = vpop.permute.xlu0 %868  ;;  %3837 = vmatprep.mubr.msk.f32.mxu1 %vm4665_vm0, %v4042_v0 }
  0xa7   : > { %v877_v35 = vsel %vm4670_vm6, %v869_v33, %v871_v24  ;;  %v278_v24 = vand.u32 127, %v277_v21 }
  0xa8   : > { %3693 = vmatpush1.msk.msra.mxu0 %vm377_vm2, %v877_v35 }
  0xa9   : > { %3694 = vmatmul.mubr.msk.f32.vlgmr.msra.gmra.mxu0 %vm373_vm4, %v3691_v34  ;;  %v4328_v27 = vadd.s32 256, %v278_v24 }
  0xaa   : > { %v875_v36 = vpop.permute.xlu1 %874  ;;  %v1046_v37 = vpop.permute.xlu0 %1045  ;;  %1126 = vmatprep.mubr.f32.mxu0 %v4042_v0 }
  0xab   : > { %v879_v38 = vsel %vm4670_vm6, %v873_v29, %v875_v36  ;;  %v1051_v39 = vsel %vm4669_vm7, %v1044_v32, %v1046_v37  ;;  %v4331_v30 = vmul.u32.u64.low 3817748708, %v4328_v27  ;;  %v4332_v31 = vmul.u32.u64.high 3817748708, %v4328_v27, %v4331_v30 }
  0xac   : > { %3836 = vmatpush3.msk.msra.mxu1 %vm377_vm2, %v879_v38  ;;  %3698 = vmatprep.subr.msk.mxu0 %vm377_vm2, %v1051_v39  ;;  %v4334_v35 = vmul.u32.u64.low 3817748708, %v278_v24  ;;  %v4335_v36 = vmul.u32.u64.high 3817748708, %v278_v24, %v4334_v35 }
  0xad   : > { %3840 = vmatprep.subr.mxu1 %v4042_v0  ;;  %3838 = vmatmul.mubr.msk.f32.vlgmr.msra.gmra.mxu1 %vm373_vm4, %v3691_v34 }
  0xae   : > { %v1217_v40 = vpop.permute.xlu1 %1216  ;;  %v1042_v41 = vpop.permute.xlu0 %1041  ;;  %3842 = vmatprep.mubr.msk.f32.mxu1 %vm4665_vm0, %v4042_v0 }
  0xaf   : > { %v1050_v43 = vsel %vm4669_vm7, %v1042_v41, %v1044_v32  ;;  %v279_v32 = vadd.s32 128, %v278_v24  ;;  %v309_v41 = vshrl.u32 %v4332_v31, 4 }
  0xb0   : > { %3699 = vmatpush1.msk.msra.mxu0 %vm377_vm2, %v1050_v43 }
  0xb1   : > { %3700 = vmatmul.mubr.msk.f32.vlgmr.msra.gmra.mxu0 %vm373_vm4, %v3697_v42 }
  0xb2   : > { %v1048_v44 = vpop.permute.xlu1 %1047  ;;  %v1219_v45 = vpop.permute.xlu0 %1218  ;;  %1299 = vmatprep.mubr.f32.mxu0 %v4042_v0 }
  0xb3   : > { %v1052_v46 = vsel %vm4669_vm7, %v1046_v37, %v1048_v44  ;;  %v1224_v47 = vsel %vm4668_vm8, %v1217_v40, %v1219_v45  ;;  %v4337_v37 = vmul.u32.u64.low 3817748708, %v279_v32  ;;  %v4338_v38 = vmul.u32.u64.high 3817748708, %v279_v32, %v4337_v37 }
  0xb4   : > { %3841 = vmatpush3.msk.msra.mxu1 %vm377_vm2, %v1052_v46  ;;  %3704 = vmatprep.subr.msk.mxu0 %vm377_vm2, %v1224_v47  ;;  %v287_v44 = vshrl.u32 %v4335_v36, 4 }
  0xb5   : > { %3843 = vmatmul.mubr.msk.f32.vlgmr.msra.gmra.mxu1 %vm373_vm4, %v3697_v42  ;;  %3845 = vmatprep.subr.mxu1 %v4042_v0  ;;  %v298_v46 = vshrl.u32 %v4338_v38, 4 }
  0xb6   : > { %v1390_v48 = vpop.permute.xlu1 %1389  ;;  %v1215_v49 = vpop.permute.xlu0 %1214  ;;  %3847 = vmatprep.mubr.msk.f32.mxu1 %vm4665_vm0, %v4042_v0 }
  0xb7   : > { %v1223_v51 = vsel %vm4668_vm8, %v1215_v49, %v1217_v40 }
  0xb8   : > { %3705 = vmatpush1.msk.msra.mxu0 %vm377_vm2, %v1223_v51 }
  0xb9   : > { %3706 = vmatmul.mubr.msk.f32.vlgmr.msra.gmra.mxu0 %vm373_vm4, %v3703_v50 }
  0xba   : > { %v1221_v52 = vpop.permute.xlu1 %1220  ;;  %v1392_v53 = vpop.permute.xlu0 %1391  ;;  %1472 = vmatprep.mubr.f32.mxu0 %v4042_v0 }
  0xbb   : > { %v1225_v54 = vsel %vm4668_vm8, %v1219_v45, %v1221_v52  ;;  %v1397_v55 = vsel %vm4667_vm9, %v1390_v48, %v1392_v53  ;;  %v310_v45 = vmul.u32 18, %v309_v41 }
  0xbc   : > { %3846 = vmatpush3.msk.msra.mxu1 %vm377_vm2, %v1225_v54  ;;  %3710 = vmatprep.subr.msk.mxu0 %vm377_vm2, %v1397_v55 }
  0xbd   : > { %3848 = vmatmul.mubr.msk.f32.vlgmr.msra.gmra.mxu1 %vm373_vm4, %v3703_v50  ;;  %3850 = vmatprep.subr.mxu1 %v4042_v0  ;;  %v311_v52 = vsub.s32 %v4328_v27, %v310_v45 }
  0xbe   : > { %v1563_v56 = vpop.permute.xlu1 %1562  ;;  %v1388_v57 = vpop.permute.xlu0 %1387  ;;  %3852 = vmatprep.mubr.msk.f32.mxu1 %vm4665_vm0, %v4042_v0 }
  0xbf   : > { %v1396_v59 = vsel %vm4667_vm9, %v1388_v57, %v1390_v48  ;;  %v288_v48 = vmul.u32 18, %v287_v44  ;;  %vm316_vm12 = vcmp.ne.s32.totalorder %v311_v52, 0  ;;  %vm319_vm13 = vcmp.lt.s32.totalorder %v311_v52, 0 }
  0xc0   : > { %3711 = vmatpush1.msk.msra.mxu0 %vm377_vm2, %v1396_v59 }
  0xc1   : > { %3712 = vmatmul.mubr.msk.f32.vlgmr.msra.gmra.mxu0 %vm373_vm4, %v3709_v58 }
  0xc2   : > { %v1394_v60 = vpop.permute.xlu1 %1393  ;;  %v1565_v61 = vpop.permute.xlu0 %1564  ;;  %1645 = vmatprep.mubr.f32.mxu0 %v4042_v0 }
  0xc3   : > { %v1398_v62 = vsel %vm4667_vm9, %v1392_v53, %v1394_v60  ;;  %v1570_v63 = vsel %vm4664_vm10, %v1563_v56, %v1565_v61  ;;  %v299_v53 = vmul.u32 18, %v298_v46 }
  0xc4   : > { %3851 = vmatpush3.msk.msra.mxu1 %vm377_vm2, %v1398_v62  ;;  %3716 = vmatprep.subr.msk.mxu0 %vm377_vm2, %v1570_v63  ;;  %v325_v62 = vadd.s32 18, %v311_v52 }
  0xc5   : > { %3853 = vmatmul.mubr.msk.f32.vlgmr.msra.gmra.mxu1 %vm373_vm4, %v3709_v58  ;;  %3855 = vmatprep.subr.mxu1 %v4042_v0  ;;  %v300_v60 = vsub.s32 %v279_v32, %v299_v53 }
  0xc6   : > { %v1736_v1 = vpop.permute.xlu1 %1735  ;;  %v1561_v2 = vpop.permute.xlu0 %1560  ;;  %3857 = vmatprep.mubr.msk.f32.mxu1 %vm4665_vm0, %v4042_v0 }
  0xc7   : > { %v1569_v4 = vsel %vm4664_vm10, %v1561_v2, %v1563_v56  ;;  %v289_v56 = vsub.s32 %v278_v24, %v288_v48 }
  0xc8   : > { %3717 = vmatpush1.msk.msra.mxu0 %vm377_vm2, %v1569_v4 }
  0xc9   : > { %3718 = vmatmul.mubr.msk.f32.vlgmr.msra.gmra.mxu0 %vm373_vm4, %v3715_v3  ;;  %vm314_vm14 = vcmp.ne.s32.totalorder %v289_v56, 0  ;;  %vm317_vm15 = vcmp.lt.s32.totalorder %v289_v56, 0 }
  0xca   : > { %v1567_v5 = vpop.permute.xlu1 %1566  ;;  %v1738_v6 = vpop.permute.xlu0 %1737  ;;  %1818 = vmatprep.mubr.f32.mxu0 %v4042_v0  ;;  %vm320_vm9 = vmand %vm317_vm15, %vm314_vm14  ;;  %vm340_vm14 = vcmp.lt.s32.totalorder %v4328_v27, 288  ;;  %vm350_vm15 = vcmask 584992  }
  0xcb   : > { %v1571_v7 = vsel %vm4664_vm10, %v1565_v61, %v1567_v5  ;;  %v1743_v8 = vsel %vm4663_vm11, %v1736_v1, %v1738_v6  ;;  %v323_v5 = vadd.s32 18, %v289_v56  ;;  %vm315_vm10 = vcmp.ne.s32.totalorder %v300_v60, 0  ;;  %351 = vst.msk [vmem:[#allocation2 + $0xc] sm:$0xf] %vm350_vm15, %v4042_v0 }
  0xcc   : > { %3856 = vmatpush3.msk.msra.mxu1 %vm377_vm2, %v1571_v7  ;;  %3722 = vmatprep.subr.msk.mxu0 %vm377_vm2, %v1743_v8 }
  0xcd   : > { %3858 = vmatmul.mubr.msk.f32.vlgmr.msra.gmra.mxu1 %vm373_vm4, %v3715_v3  ;;  %3860 = vmatprep.subr.mxu1 %v4042_v0 }
  0xce   : > { %v1740_v9 = vpop.permute.xlu1 %1739  ;;  %v1734_v10 = vpop.permute.xlu0 %1733  ;;  %3862 = vmatprep.mubr.msk.f32.mxu1 %vm4665_vm0, %v4042_v0 }
  0xcf   : > { %v1744_v12 = vsel %vm4663_vm11, %v1738_v6, %v1740_v9  ;;  %v1742_v13 = vsel %vm4663_vm11, %v1734_v10, %v1736_v1  ;;  %vm322_vm11 = vmand %vm319_vm13, %vm316_vm12 }
  0xd0   : > { %3723 = vmatpush1.msk.msra.mxu0 %vm377_vm2, %v1742_v13  ;;  %3861 = vmatpush3.msk.msra.mxu1 %vm377_vm2, %v1744_v12  ;;  %v328_v7 = vsel %vm322_vm11, %v325_v62, %v311_v52  ;;  %v326_v13 = vsel %vm320_vm9, %v323_v5, %v289_v56 }
  0xd1   : > { %3724 = vmatmul.mubr.msk.f32.vlgmr.msra.gmra.mxu0 %vm373_vm4, %v3721_v11  ;;  %3863 = vmatmul.mubr.msk.f32.vlgmr.msra.gmra.mxu1 %vm373_vm4, %v3721_v11  ;;  %v324_v11 = vadd.s32 18, %v300_v60  ;;  %vm331_vm7 = vcmp.ge.s32.totalorder %v328_v7, 1  ;;  %vm334_vm6 = vcmp.le.s32.totalorder %v328_v7, 16  ;;  %vm329_vm12 = vcmp.ge.s32.totalorder %v326_v13, 1 }
  0xd2   : > { %2072 = vmatprep.mubr.f32.mxu0 %v4042_v0  ;;  %3865 = vmatprep.subr.mxu1 %v4042_v0  ;;  %vm332_vm13 = vcmp.le.s32.totalorder %v326_v13, 16  ;;  %vm337_vm11 = vmand %vm331_vm7, %vm334_vm6  ;;  %vm348_vm7 = vcmask 289792  }
  0xd3   : > { %3867 = vmatprep.mubr.msk.f32.mxu1 %vm4665_vm0, %v4042_v0  ;;  %vm318_vm0 = vcmp.lt.s32.totalorder %v300_v60, 0  ;;  %vm4345_vm9 = vmand %vm329_vm12, %vm332_vm13  ;;  %349 = vst.msk [vmem:[#allocation2] sm:$0xf] %vm348_vm7, %v4042_v0  ;;  %vm1972_vm12 = vcmask 1043744   ;;  %vm1973_vm13 = vcmask 1047556   ;;  %vm4679_vm7 = vcmask 760832  }
  0xd4   : > { %vm321_vm8 = vmand %vm318_vm0, %vm315_vm10 }
  0xd5   : > { %vm4349_vm10 = vmand %vm337_vm11, %vm340_vm14  ;;  %vm1966_vm11 = vcmask 293888  }
  0xd6   : > { %vm1974_vm14 = vmor %vm1973_vm13, %vm1972_vm12  ;;  %vm4681_vm12 = vcmask 752640  }
  0xd7   : > { %vm4680_vm15 = vmmov %vm4679_vm7 }
  0xd8   : > { %vm4682_vm13 = vmmov %vm4681_vm12 }
 0x156   : > { %v450_v14 = vpop.f32.mrf.mxu0 }
 0x157   : > { %v521_v15 = vpop.f32.mrf.mxu1 }
 0x158   : > { %v452_v17 = vpop.f32.mrf.mxu0 }
 0x159   : > { %v3824_v16 = vpop.f32.mrf.mxu1 }
 0x15a   : > { %v612_v19 = vpop.f32.mrf.mxu0 }
 0x15b   : > { %v613_v49 = vadd.f32 %v612_v19, %v450_v14 }
 0x15c   : > { %v614_v22 = vpop.f32.mrf.mxu0 }
 0x15d   : > { %v683_v18 = vpop.f32.mrf.mxu1  ;;  %v615_v57 = vadd.f32 %v614_v22, %v452_v17 }
 0x15e   : > { %v684_v50 = vadd.f32 %v683_v18, %v521_v15  ;;  %v327_v18 = vsel %vm321_vm8, %v324_v11, %v300_v60 }
 0x15f   : > { %v3829_v20 = vpop.f32.mrf.mxu1  ;;  %vm330_vm0 = vcmp.ge.s32.totalorder %v327_v18, 1  ;;  %vm333_vm8 = vcmp.le.s32.totalorder %v327_v18, 16 }
 0x160   : > { %vm4353_vm6 = vmand %vm330_vm0, %vm333_vm8  ;;  %vm1976_vm0 = vcmask 293892  }
 0x161   : > { %v782_v25 = vpop.f32.mrf.mxu0  ;;  %vm1977_vm8 = vmor %vm1976_vm0, %vm377_vm2 }
 0x162   : > { %v857_v58 = vadd.f32 %v782_v25, %v613_v49 }
 0x163   : > { %v784_v28 = vpop.f32.mrf.mxu0 }
 0x164   : > { %v858_v63 = vadd.f32 %v784_v28, %v615_v57 }
 0x165   : > { %v853_v23 = vpop.f32.mrf.mxu1 }
 0x166   : > { %v859_v59 = vadd.f32 %v853_v23, %v684_v50 }
 0x167   : > { %v3834_v26 = vpop.f32.mrf.mxu1 }
 0x169   : > { %v955_v33 = vpop.f32.mrf.mxu0 }
 0x16a   : > { %v1030_v1 = vadd.f32 %v955_v33, %v857_v58 }
 0x16b   : > { %v957_v39 = vpop.f32.mrf.mxu0 }
 0x16c   : > { %v1031_v8 = vadd.f32 %v957_v39, %v858_v63 }
 0x16d   : > { %v1026_v29 = vpop.f32.mrf.mxu1 }
 0x16e   : > { %v1032_v2 = vadd.f32 %v1026_v29, %v859_v59 }
 0x16f   : > { %v3839_v34 = vpop.f32.mrf.mxu1 }
 0x171   : > { %v1128_v42 = vpop.f32.mrf.mxu0 }
 0x172   : > { %v1203_v9 = vadd.f32 %v1128_v42, %v1030_v1  ;;  %v344_v1 = vld [vmem:[%s4657_s2] sm:$0xf] }
 0x173   : > { %v1130_v47 = vpop.f32.mrf.mxu0 }
 0x174   : > { %v1204_v15 = vadd.f32 %v1130_v47, %v1031_v8 }
 0x175   : > { %v1199_v40 = vpop.f32.mrf.mxu1 }
 0x176   : > { %v1205_v10 = vadd.f32 %v1199_v40, %v1032_v2 }
 0x177   : > { %v3844_v43 = vpop.f32.mrf.mxu1 }
 0x179   : > { %v1301_v54 = vpop.f32.mrf.mxu0 }
 0x17a   : > { %v1376_v16 = vadd.f32 %v1301_v54, %v1203_v9 }
 0x17b   : > { %v1303_v61 = vpop.f32.mrf.mxu0 }
 0x17c   : > { %v1377_v20 = vadd.f32 %v1303_v61, %v1204_v15 }
 0x17d   : > { %v1372_v51 = vpop.f32.mrf.mxu1 }
 0x17e   : > { %v1378_v17 = vadd.f32 %v1372_v51, %v1205_v10 }
 0x17f   : > { %v3849_v55 = vpop.f32.mrf.mxu1 }
 0x180   : > { %v4053_v55 = vmov 0  }
 0x181   : > { %v1474_v3 = vpop.f32.mrf.mxu0  ;;  %3970 = vset.pattern.permute.xlu0 %v4053_v55  ;;  %3971 = vset.pattern.permute.xlu1 %v4053_v55 }
 0x182   : > { %v1549_v21 = vadd.f32 %v1474_v3, %v1376_v16 }
 0x183   : > { %v1476_v12 = vpop.f32.mrf.mxu0 }
 0x184   : > { %v1550_v25 = vadd.f32 %v1476_v12, %v1377_v20 }
 0x185   : > { %v1545_v4 = vpop.f32.mrf.mxu1 }
 0x186   : > { %v1551_v22 = vadd.f32 %v1545_v4, %v1378_v17  ;;  %v345_v4 = vld [vmem:[%s4658_s3] sm:$0xf] }
 0x187   : > { %v3854_v6 = vpop.f32.mrf.mxu1 }
 0x189   : > { %v1647_v14 = vpop.f32.mrf.mxu0 }
 0x18a   : > { %v1722_v26 = vadd.f32 %v1647_v14, %v1549_v21 }
 0x18b   : > { %v1649_v23 = vpop.f32.mrf.mxu0 }
 0x18c   : > { %v1723_v33 = vadd.f32 %v1649_v23, %v1550_v25 }
 0x18d   : > { %v1718_v19 = vpop.f32.mrf.mxu1 }
 0x18e   : > { %v1724_v28 = vadd.f32 %v1718_v19, %v1551_v22 }
 0x18f   : > { %v3859_v24 = vpop.f32.mrf.mxu1 }
 0x191   : > { %v1820_v30 = vpop.f32.mrf.mxu0  ;;  %v1891_v31 = vpop.f32.mrf.mxu1 }
 0x192   : > { %v1895_v34 = vadd.f32 %v1820_v30, %v1722_v26  ;;  %v1897_v27 = vadd.f32 %v1891_v31, %v1724_v28 }
 0x193   : > { %v1822_v36 = vpop.f32.mrf.mxu0  ;;  %v3864_v37 = vpop.f32.mrf.mxu1 }
 0x194   : > { %v1904_v38 = vsel %vm4345_vm9, %v1895_v34, 0.0  ;;  %v1896_v39 = vadd.f32 %v1822_v36, %v1723_v33  ;;  %v1906_v40 = vsel %vm4349_vm10, %v1897_v27, 0.0 }
 0x195   : > { %v1915_v41 = vmul.f32 %v1904_v38, %v1895_v34  ;;  %v1907_v44 = vsel %vm377_vm2, %v1904_v38, 0.0  ;;  %v1917_v46 = vmul.f32 %v1906_v40, %v1897_v27  ;;  %v1910_v48 = vsel %vm377_vm2, %v1906_v40, 0.0 }
 0x196   : > { %v1905_v42 = vsel %vm4353_vm6, %v1896_v39, 0.0 }
 0x197   : > { %v1916_v43 = vmul.f32 %v1905_v42, %v1896_v39  ;;  %v1908_v45 = vsel %vm377_vm2, %v1905_v42, 0.0  ;;  %v1918_v49 = vsel %vm377_vm2, %v1915_v41, 0.0  ;;  %v1921_v53 = vsel %vm377_vm2, %v1917_v46, 0.0 }
 0x198   : > { %v1909_v47 = vadd.f32 %v1908_v45, %v1907_v44  ;;  %v3727_v44 = vld [vmem:[%s4659_s4 + $0x4] sm:$0xf] }
 0x199   : > { %v1919_v50 = vsel %vm377_vm2, %v1916_v43, 0.0 }
 0x19a   : > { %v1911_v51 = vadd.f32 %v1910_v48, %v1909_v47  ;;  %v1920_v52 = vadd.f32 %v1919_v50, %v1918_v49 }
 0x19c   : > { %1912 = vadd.xlane.f32.xlu0 %v1911_v51  ;;  %v1922_v54 = vadd.f32 %v1921_v53, %v1920_v52 }
 0x19e   : > { %1923 = vadd.xlane.f32.xlu1 %v1922_v54 }
 0x225   : > { %v1913_v56 = vpop.xlane.xlu0 %1912 }
 0x226   : > { %v1914_v57 = vmul.f32 0.00390625, %v1913_v56  ;;  %v1979_v56 = vld [vmem:[%s4659_s4] sm:$0xf] }
 0x227   : > { %v1924_v58 = vpop.xlane.xlu1 %1923 }
 0x228   : > { %v1926_v59 = vmul.f32 %v1914_v57, %v1914_v57  ;;  %v1925_v60 = vmul.f32 0.00390625, %v1924_v58 }
 0x22a   : > { %v1927_v61 = vsub.f32 %v1925_v60, %v1926_v59 }
 0x22c   : > { %v1928_v62 = vmax.f32 %v1927_v61, 0.0  ;;  %v3738_v61 = vld [vmem:[%s4659_s4 + $0x8] sm:$0xf] }
 0x22e   : > { %v1929_v63 = vadd.f32 1e-05, %v1928_v62 }
 0x230   : > { %3976 = vrsqrt.f32 %v1929_v63 }
 0x23d   : > { %v3977_v2 = vpop.eup %3976 }
 0x23e   : > { %v1931_v3 = vmul.f32 %v3977_v2, %v344_v1 }
 0x240   : > { %1936 = vperm.xlu0 %3970, %v1931_v3   ;;  %v1932_v5 = vmul.f32 %v1931_v3, %v1914_v57  ;;  %v4461_v3 = vld [vmem:[%s4659_s4 + $0xc] sm:$0xf] }
 0x242   : > { %v1933_v6 = vsub.f32 %v345_v4, %v1932_v5 }
 0x244   : > { %1944 = vperm.xlu1 %3971, %v1933_v6  }
 0x2bb   : > { %v1937_v7 = vpop.permute.xlu0 %1936 }
 0x2bc   : > { %v1939_v8 = vmul.f32 %v1937_v7, %v1895_v34  ;;  %v1940_v9 = vmul.f32 %v1937_v7, %v1896_v39  ;;  %v1941_v11 = vmul.f32 %v1937_v7, %v1897_v27 }
 0x2bf   : > { %v1945_v10 = vpop.permute.xlu1 %1944 }
 0x2c0   : > { %v1947_v12 = vadd.f32 %v1945_v10, %v1939_v8  ;;  %v1948_v13 = vadd.f32 %v1945_v10, %v1940_v9  ;;  %v1949_v14 = vadd.f32 %v1945_v10, %v1941_v11  ;;  %v4476_v8 = vld [vmem:[%s4659_s4 + $0x10] sm:$0xf] }
 0x2c2   : > { %v1950_v15 = vmax.f32 %v1947_v12, 0.0  ;;  %v1951_v16 = vmax.f32 %v1948_v13, 0.0  ;;  %v1952_v20 = vmax.f32 %v1949_v14, 0.0  ;;  %v3756_v13 = vld [vmem:[%s4659_s4 + $0x14] sm:$0xf] }
 0x2c4   : > { %v1953_v17 = vsel %vm4345_vm9, %v1950_v15, 0.0  ;;  %v1954_v18 = vsel %vm4353_vm6, %v1951_v16, 0.0  ;;  %v1955_v21 = vsel %vm4349_vm10, %v1952_v20, 0.0 }
 0x2c5   : > { %v1959_v19 = vcombine.low %v1953_v17, %v1954_v18 }
 0x2c7   : > { %1960 = vrot.lane.b32.xlu1 %v1959_v19, %s4054_s15  ;;  %v3762_v19 = vld [vmem:[%s4659_s4 + $0x18] sm:$0xf] }
 0x2cb   : > { %1962 = vrot.lane.b32.xlu1 %v1955_v21, %s4054_s15 }
 0x339   : > { %v1961_v22 = vpop.permute.xlu1 %1960 }
 0x33a   : > { %v1964_v23 = vrot.slane %v1961_v22, 4 }
 0x33c   : > { %v1967_v24 = vsel %vm1966_vm11, %v1964_v23, %v1961_v22 }
 0x33d   : > { %1975 = vst.msk [vmem:[#allocation2] sm:$0xff] %vm1974_vm14, %v1967_v24  ;;  %v1963_v25 = vpop.permute.xlu1 %1962  ;;  %vm4683_vm14 = vcmask 744448  }
 0x33e   : > { %v1965_v26 = vrot.slane %v1963_v25, 4  ;;  %vm4684_vm0 = vmmov %vm4683_vm14 }
 0x340   : > { %v1968_v28 = vsel %vm377_vm2, %v1964_v23, %v1965_v26 }
 0x341   : > { %v1969_v30 = vsel %vm1966_vm11, %v1968_v28, %v1963_v25  ;;  %v3768_v25 = vld [vmem:[%s4659_s4 + $0x1c] sm:$0xf] }
 0x342   : > { %1978 = vst.msk [vmem:[#allocation2 + $0x8] sm:$0xff] %vm1977_vm8, %v1969_v30  ;;  %vm4685_vm8 = vcmask 613376  }
 0x344   : > { %v1980_v31 = vld [vmem:[#allocation2] sm:$0xff] }
 0x345   : > { %2149 = vrot.lane.b32.xlu0 %v1980_v31, %s4045_s19  ;;  %1988 = vrot.lane.b32.xlu1 %v1980_v31, %s4043_s18  ;;  %v2316_v34 = vcombine.high %v1980_v31, %v1980_v31 }
 0x349   : > { %2318 = vrot.lane.b32.xlu0 %v1980_v31, %s4046_s20  ;;  %v1981_v33 = vld [vmem:[#allocation2 + $0x8] sm:$0xff] }
 0x34a   : > { %1992 = vrot.lane.b32.xlu1 %v1981_v33, %s4043_s18  ;;  %v2317_v27 = vcombine.high %v1981_v33, %v1981_v33 }
 0x34d   : > { %2490 = vrot.lane.b32.xlu0 %v1980_v31, %s4047_s21 }
 0x34e   : > { %1990 = vrot.lane.b32.xlu1 %v2316_v34, %s4043_s18 }
 0x351   : > { %2662 = vrot.lane.b32.xlu0 %v1980_v31, %s4048_s22 }
 0x352   : > { %2151 = vrot.lane.b32.xlu1 %v2316_v34, %s4045_s19 }
 0x355   : > { %2834 = vrot.lane.b32.xlu0 %v1980_v31, %s4049_s23 }
 0x356   : > { %2320 = vrot.lane.b32.xlu1 %v2316_v34, %s4046_s20 }
 0x359   : > { %3006 = vrot.lane.b32.xlu0 %v1980_v31, %s4050_s29 }
 0x35a   : > { %2492 = vrot.lane.b32.xlu1 %v2316_v34, %s4047_s21 }
 0x35d   : > { %3178 = vrot.lane.b32.xlu0 %v1980_v31, %s4051_s8 }
 0x35e   : > { %2664 = vrot.lane.b32.xlu1 %v2316_v34, %s4048_s22 }
 0x361   : > { %2153 = vrot.lane.b32.xlu0 %v1981_v33, %s4045_s19 }
 0x362   : > { %2836 = vrot.lane.b32.xlu1 %v2316_v34, %s4049_s23 }
 0x365   : > { %2322 = vrot.lane.b32.xlu0 %v1981_v33, %s4046_s20 }
 0x366   : > { %3008 = vrot.lane.b32.xlu1 %v2316_v34, %s4050_s29 }
 0x369   : > { %2494 = vrot.lane.b32.xlu0 %v1981_v33, %s4047_s21 }
 0x36a   : > { %3180 = vrot.lane.b32.xlu1 %v2316_v34, %s4051_s8 }
 0x36d   : > { %2666 = vrot.lane.b32.xlu0 %v1981_v33, %s4048_s22 }
 0x36e   : > { %3352 = vrot.lane.b32.xlu1 %v2316_v34, %s4052_s9 }
 0x371   : > { %2838 = vrot.lane.b32.xlu0 %v1981_v33, %s4049_s23 }
 0x372   : > { %1994 = vrot.lane.b32.xlu1 %v2317_v27, %s4043_s18 }
 0x375   : > { %3010 = vrot.lane.b32.xlu0 %v1981_v33, %s4050_s29 }
 0x376   : > { %2155 = vrot.lane.b32.xlu1 %v2317_v27, %s4045_s19  ;;  %s3917_s19 = smul.u32 192, %s4117_s28 }
 0x379   : > { %3182 = vrot.lane.b32.xlu0 %v1981_v33, %s4051_s8 }
 0x37a   : > { %2324 = vrot.lane.b32.xlu1 %v2317_v27, %s4046_s20 }
 0x37d   : > { %3354 = vrot.lane.b32.xlu0 %v1981_v33, %s4052_s9 }
 0x37e   : > { %2496 = vrot.lane.b32.xlu1 %v2317_v27, %s4047_s21 }
 0x381   : > { %3350 = vrot.lane.b32.xlu0 %v1980_v31, %s4052_s9 }
 0x382   : > { %2668 = vrot.lane.b32.xlu1 %v2317_v27, %s4048_s22 }
 0x386   : > { %2840 = vrot.lane.b32.xlu1 %v2317_v27, %s4049_s23 }
 0x38a   : > { %3012 = vrot.lane.b32.xlu1 %v2317_v27, %s4050_s29  ;;  %s4613_s29 = scalar_lea.hbm %s4662_s7, %s3917_s19 }
 0x38e   : > { %3184 = vrot.lane.b32.xlu1 %v2317_v27, %s4051_s8  ;;  %s4055_s8 = smov [#allocation3]  }
 0x392   : > { %3356 = vrot.lane.b32.xlu1 %v2317_v27, %s4052_s9  ;;  %s3984_s9 = sshll.u32 %s4055_s8, 4  ;;  %s3985_s9 = int_to_ptr.vmem [resolvable:$false] %s3984_s9 }
 0x393   : > { %s3986_s16 = scalar_lea.vmem %s3985_s9, 384 }
 0x3b7   : > { %v2150_v36 = vpop.permute.xlu0 %2149  ;;  %v1989_v37 = vpop.permute.xlu1 %1988 }
 0x3bb   : > { %v2319_v38 = vpop.permute.xlu0 %2318 }
 0x3bc   : > { %v1993_v39 = vpop.permute.xlu1 %1992 }
 0x3bf   : > { %v2491_v40 = vpop.permute.xlu0 %2490 }
 0x3c0   : > { %v1991_v41 = vpop.permute.xlu1 %1990 }
 0x3c1   : > { %v1996_v42 = vsel %vm369_vm1, %v1989_v37, %v1991_v41  ;;  %v1997_v43 = vsel %vm369_vm1, %v1991_v41, %v1993_v39 }
 0x3c2   : > { %3728 = vmatprep.subr.msk.mxu0 %vm377_vm2, %v1997_v43 }
 0x3c3   : > { %v2663_v45 = vpop.permute.xlu0 %2662  ;;  %3729 = vmatpush1.msk.msra.mxu0 %vm377_vm2, %v1996_v42 }
 0x3c4   : > { %v2152_v46 = vpop.permute.xlu1 %2151  ;;  %3730 = vmatmul.mubr.msk.f32.vlgmr.msra.gmra.mxu0 %vm373_vm4, %v3727_v44 }
 0x3c5   : > { %2233 = vmatprep.mubr.f32.mxu0 %v4042_v0  ;;  %v2157_v57 = vsel %vm533_vm3, %v2150_v36, %v2152_v46  ;;  %v3774_v36 = vld [vmem:[%s4659_s4 + $0x20] sm:$0xf] }
 0x3c7   : > { %v2835_v47 = vpop.permute.xlu0 %2834 }
 0x3c8   : > { %v2321_v48 = vpop.permute.xlu1 %2320 }
 0x3c9   : > { %v2326_v62 = vsel %vm703_vm5, %v2319_v38, %v2321_v48 }
 0x3cb   : > { %v3007_v49 = vpop.permute.xlu0 %3006 }
 0x3cc   : > { %v2493_v50 = vpop.permute.xlu1 %2492 }
 0x3cd   : > { %v2498_v4 = vsel %vm4680_vm15, %v2491_v40, %v2493_v50  ;;  %vm4688_vm15 = vcmask 605184  }
 0x3cf   : > { %v4434_v51 = vpop.permute.xlu0 %3178 }
 0x3d0   : > { %v2665_v52 = vpop.permute.xlu1 %2664 }
 0x3d1   : > { %v2670_v9 = vsel %vm4682_vm13, %v2663_v45, %v2665_v52 }
 0x3d3   : > { %v2154_v53 = vpop.permute.xlu0 %2153 }
 0x3d4   : > { %v2158_v54 = vsel %vm533_vm3, %v2152_v46, %v2154_v53  ;;  %v2837_v55 = vpop.permute.xlu1 %2836 }
 0x3d5   : > { %3733 = vmatprep.subr.msk.mxu0 %vm377_vm2, %v2158_v54  ;;  %v2842_v14 = vsel %vm4684_vm0, %v2835_v47, %v2837_v55 }
 0x3d6   : > { %3734 = vmatpush1.msk.msra.mxu0 %vm377_vm2, %v2157_v57 }
 0x3d7   : > { %v2323_v58 = vpop.permute.xlu0 %2322  ;;  %3735 = vmatmul.mubr.msk.f32.vlgmr.msra.gmra.mxu0 %vm373_vm4, %v1979_v56 }
 0x3d8   : > { %v2327_v59 = vsel %vm703_vm5, %v2321_v48, %v2323_v58  ;;  %v3009_v60 = vpop.permute.xlu1 %3008  ;;  %2402 = vmatprep.mubr.f32.mxu0 %v4042_v0 }
 0x3d9   : > { %3739 = vmatprep.subr.msk.mxu0 %vm377_vm2, %v2327_v59 }
 0x3da   : > { %3740 = vmatpush1.msk.msra.mxu0 %vm377_vm2, %v2326_v62 }
 0x3db   : > { %v4452_v63 = vpop.permute.xlu0 %2494  ;;  %3741 = vmatmul.mubr.msk.f32.vlgmr.msra.gmra.mxu0 %vm373_vm4, %v3738_v61 }
 0x3dc   : > { %v2499_v1 = vsel %vm4679_vm7, %v2493_v50, %v4452_v63  ;;  %v3181_v2 = vpop.permute.xlu1 %3180  ;;  %2574 = vmatprep.mubr.f32.mxu0 %v4042_v0  ;;  %vm4686_vm7 = vmmov 0  }
 0x3dd   : > { %3745 = vmatprep.subr.msk.mxu0 %vm377_vm2, %v2499_v1 }
 0x3de   : > { %3746 = vmatpush1.msk.msra.mxu0 %vm377_vm2, %v2498_v4 }
 0x3df   : > { %v4466_v5 = vpop.permute.xlu0 %2666  ;;  %3747 = vmatmul.mubr.msk.f32.vlgmr.msra.gmra.mxu0 %vm373_vm4, %v4461_v3 }
 0x3e0   : > { %v2671_v6 = vsel %vm4681_vm12, %v2665_v52, %v4466_v5  ;;  %v3353_v7 = vpop.permute.xlu1 %3352  ;;  %2746 = vmatprep.mubr.f32.mxu0 %v4042_v0  ;;  %vm4690_vm12 = vcmask 596992  }
 0x3e1   : > { %3751 = vmatprep.subr.msk.mxu0 %vm377_vm2, %v2671_v6  ;;  %vm4692_vm13 = vmmov %vm4690_vm12 }
 0x3e2   : > { %3752 = vmatpush1.msk.msra.mxu0 %vm377_vm2, %v2670_v9 }
 0x3e3   : > { %v4481_v10 = vpop.permute.xlu0 %2838  ;;  %3753 = vmatmul.mubr.msk.f32.vlgmr.msra.gmra.mxu0 %vm373_vm4, %v4476_v8 }
 0x3e4   : > { %v2843_v11 = vsel %vm4683_vm14, %v2837_v55, %v4481_v10  ;;  %v1995_v12 = vpop.permute.xlu1 %1994  ;;  %2918 = vmatprep.mubr.f32.mxu0 %v4042_v0  ;;  %vm4693_vm14 = vcmask 752640  }
 0x3e5   : > { %v1998_v15 = vsel %vm369_vm1, %v1993_v39, %v1995_v12  ;;  %3757 = vmatprep.subr.msk.mxu0 %vm377_vm2, %v2843_v11  ;;  %vm4687_vm1 = vmmov %vm4685_vm8 }
 0x3e6   : > { %3866 = vmatpush3.msk.msra.mxu1 %vm377_vm2, %v1998_v15  ;;  %3758 = vmatpush1.msk.msra.mxu0 %vm377_vm2, %v2842_v14  ;;  %v3014_v20 = vsel %vm4687_vm1, %v3007_v49, %v3009_v60 }
 0x3e7   : > { %v3011_v16 = vpop.permute.xlu0 %3010  ;;  %3868 = vmatmul.mubr.msk.f32.vlgmr.msra.gmra.mxu1 %vm373_vm4, %v3727_v44  ;;  %3759 = vmatmul.mubr.msk.f32.vlgmr.msra.gmra.mxu0 %vm373_vm4, %v3756_v13 }
 0x3e8   : > { %v3015_v17 = vsel %vm4685_vm8, %v3009_v60, %v3011_v16  ;;  %v2156_v18 = vpop.permute.xlu1 %2155  ;;  %3870 = vmatprep.subr.mxu1 %v4042_v0  ;;  %3872 = vmatprep.mubr.msk.f32.mxu1 %vm4686_vm7, %v4042_v0  ;;  %vm4694_vm8 = vmmov %vm4687_vm1 }
 0x3e9   : > { %v2159_v21 = vsel %vm533_vm3, %v2154_v53, %v2156_v18  ;;  %3763 = vmatprep.subr.msk.mxu0 %vm377_vm2, %v3015_v17  ;;  %3090 = vmatprep.mubr.f32.mxu0 %v4042_v0  ;;  %vm4689_vm3 = vmmov %vm4688_vm15 }
 0x3ea   : > { %3871 = vmatpush3.msk.msra.mxu1 %vm377_vm2, %v2159_v21  ;;  %3764 = vmatpush1.msk.msra.mxu0 %vm377_vm2, %v3014_v20  ;;  %v3186_v26 = vsel %vm4689_vm3, %v4434_v51, %v3181_v2  ;;  %vm4695_vm1 = vmmov %vm4689_vm3 }
 0x3eb   : > { %v3183_v22 = vpop.permute.xlu0 %3182  ;;  %3873 = vmatmul.mubr.msk.f32.vlgmr.msra.gmra.mxu1 %vm373_vm4, %v1979_v56  ;;  %3765 = vmatmul.mubr.msk.f32.vlgmr.msra.gmra.mxu0 %vm373_vm4, %v3762_v19 }
 0x3ec   : > { %v3187_v23 = vsel %vm4688_vm15, %v3181_v2, %v3183_v22  ;;  %v2325_v24 = vpop.permute.xlu1 %2324  ;;  %3875 = vmatprep.subr.mxu1 %v4042_v0  ;;  %3877 = vmatprep.mubr.msk.f32.mxu1 %vm4686_vm7, %v4042_v0  ;;  %vm4696_vm15 = vmmov %vm4690_vm12 }
 0x3ed   : > { %v2328_v28 = vsel %vm703_vm5, %v2323_v58, %v2325_v24  ;;  %3769 = vmatprep.subr.msk.mxu0 %vm377_vm2, %v3187_v23  ;;  %3262 = vmatprep.mubr.f32.mxu0 %v4042_v0  ;;  %vm4691_vm5 = vcmask 760832  }
 0x3ee   : > { %3876 = vmatpush3.msk.msra.mxu1 %vm377_vm2, %v2328_v28  ;;  %3770 = vmatpush1.msk.msra.mxu0 %vm377_vm2, %v3186_v26 }
 0x3ef   : > { %v3355_v30 = vpop.permute.xlu0 %3354  ;;  %3878 = vmatmul.mubr.msk.f32.vlgmr.msra.gmra.mxu1 %vm373_vm4, %v3738_v61  ;;  %3771 = vmatmul.mubr.msk.f32.vlgmr.msra.gmra.mxu0 %vm373_vm4, %v3768_v25 }
 0x3f0   : > { %v3359_v31 = vsel %vm4690_vm12, %v3353_v7, %v3355_v30  ;;  %v2497_v33 = vpop.permute.xlu1 %2496  ;;  %3880 = vmatprep.subr.mxu1 %v4042_v0  ;;  %3882 = vmatprep.mubr.msk.f32.mxu1 %vm4686_vm7, %v4042_v0 }
 0x3f1   : > { %v2500_v34 = vsel %vm4691_vm5, %v4452_v63, %v2497_v33  ;;  %3775 = vmatprep.subr.msk.mxu0 %vm377_vm2, %v3359_v31  ;;  %3434 = vmatprep.mubr.f32.mxu0 %v4042_v0 }
 0x3f2   : > { %3881 = vmatpush3.msk.msra.mxu1 %vm377_vm2, %v2500_v34 }
 0x3f3   : > { %v3351_v27 = vpop.permute.xlu0 %3350  ;;  %3883 = vmatmul.mubr.msk.f32.vlgmr.msra.gmra.mxu1 %vm373_vm4, %v4461_v3  ;;  %3885 = vmatprep.subr.mxu1 %v4042_v0 }
 0x3f4   : > { %v3358_v37 = vsel %vm4692_vm13, %v3351_v27, %v3353_v7  ;;  %v2669_v38 = vpop.permute.xlu1 %2668  ;;  %3887 = vmatprep.mubr.msk.f32.mxu1 %vm4686_vm7, %v4042_v0 }
 0x3f5   : > { %v2672_v39 = vsel %vm4693_vm14, %v4466_v5, %v2669_v38  ;;  %3776 = vmatpush1.msk.msra.mxu0 %vm377_vm2, %v3358_v37 }
 0x3f6   : > { %3886 = vmatpush3.msk.msra.mxu1 %vm377_vm2, %v2672_v39  ;;  %3777 = vmatmul.mubr.msk.f32.vlgmr.msra.gmra.mxu0 %vm373_vm4, %v3774_v36 }
 0x3f7   : > { %3888 = vmatmul.mubr.msk.f32.vlgmr.msra.gmra.mxu1 %vm373_vm4, %v4476_v8  ;;  %3890 = vmatprep.subr.mxu1 %v4042_v0 }
 0x3f8   : > { %v2841_v40 = vpop.permute.xlu1 %2840  ;;  %3892 = vmatprep.mubr.msk.f32.mxu1 %vm4686_vm7, %v4042_v0 }
 0x3f9   : > { %v2844_v41 = vsel %vm4684_vm0, %v4481_v10, %v2841_v40 }
 0x3fa   : > { %3891 = vmatpush3.msk.msra.mxu1 %vm377_vm2, %v2844_v41 }
 0x3fb   : > { %3893 = vmatmul.mubr.msk.f32.vlgmr.msra.gmra.mxu1 %vm373_vm4, %v3756_v13  ;;  %3895 = vmatprep.subr.mxu1 %v4042_v0 }
 0x3fc   : > { %v3013_v42 = vpop.permute.xlu1 %3012  ;;  %3897 = vmatprep.mubr.msk.f32.mxu1 %vm4686_vm7, %v4042_v0 }
 0x3fd   : > { %v3016_v43 = vsel %vm4694_vm8, %v3011_v16, %v3013_v42 }
 0x3fe   : > { %3896 = vmatpush3.msk.msra.mxu1 %vm377_vm2, %v3016_v43 }
 0x3ff   : > { %3898 = vmatmul.mubr.msk.f32.vlgmr.msra.gmra.mxu1 %vm373_vm4, %v3762_v19  ;;  %3900 = vmatprep.subr.mxu1 %v4042_v0 }
 0x400   : > { %v3185_v44 = vpop.permute.xlu1 %3184  ;;  %3902 = vmatprep.mubr.msk.f32.mxu1 %vm4686_vm7, %v4042_v0 }
 0x401   : > { %v3188_v45 = vsel %vm4695_vm1, %v3183_v22, %v3185_v44 }
 0x402   : > { %3901 = vmatpush3.msk.msra.mxu1 %vm377_vm2, %v3188_v45 }
 0x403   : > { %3903 = vmatmul.mubr.msk.f32.vlgmr.msra.gmra.mxu1 %vm373_vm4, %v3768_v25  ;;  %3905 = vmatprep.subr.mxu1 %v4042_v0 }
 0x404   : > { %v3357_v46 = vpop.permute.xlu1 %3356  ;;  %3907 = vmatprep.mubr.msk.f32.mxu1 %vm4686_vm7, %v4042_v0 }
 0x405   : > { %v3360_v47 = vsel %vm4696_vm15, %v3355_v30, %v3357_v46 }
 0x406   : > { %3906 = vmatpush3.msk.msra.mxu1 %vm377_vm2, %v3360_v47 }
 0x407   : > { %3908 = vmatmul.mubr.msk.f32.vlgmr.msra.gmra.mxu1 %vm373_vm4, %v3774_v36  ;;  %vm4697_vm4 = vmmov %vm4693_vm14 }
 0x484   : > { %v2074_v48 = vpop.f32.mrf.mxu0 }
 0x486   : > { %v2076_v49 = vpop.f32.mrf.mxu0 }
 0x497   : > { %v2235_v50 = vpop.f32.mrf.mxu0 }
 0x498   : > { %v2236_v58 = vadd.f32 %v2235_v50, %v2074_v48 }
 0x499   : > { %v2237_v51 = vpop.f32.mrf.mxu0 }
 0x49a   : > { %v2238_v59 = vadd.f32 %v2237_v51, %v2076_v49 }
 0x49b   : > { %v2404_v52 = vpop.f32.mrf.mxu0 }
 0x49c   : > { %v2479_v63 = vadd.f32 %v2404_v52, %v2236_v58 }
 0x49d   : > { %v2406_v53 = vpop.f32.mrf.mxu0 }
 0x49e   : > { %v2480_v1 = vadd.f32 %v2406_v53, %v2238_v59 }
 0x49f   : > { %v2576_v54 = vpop.f32.mrf.mxu0 }
 0x4a0   : > { %v2651_v6 = vadd.f32 %v2576_v54, %v2479_v63 }
 0x4a1   : > { %v2578_v55 = vpop.f32.mrf.mxu0 }
 0x4a2   : > { %v2652_v7 = vadd.f32 %v2578_v55, %v2480_v1 }
 0x4a3   : > { %v2748_v56 = vpop.f32.mrf.mxu0 }
 0x4a4   : > { %v2823_v11 = vadd.f32 %v2748_v56, %v2651_v6 }
 0x4a5   : > { %v2750_v57 = vpop.f32.mrf.mxu0 }
 0x4a6   : > { %v2824_v12 = vadd.f32 %v2750_v57, %v2652_v7  ;;  %v347_v7 = vld [vmem:[%s4661_s6] sm:$0xf] }
 0x4a7   : > { %v2145_v60 = vpop.f32.mrf.mxu1  ;;  %v2920_v0 = vpop.f32.mrf.mxu0 }
 0x4a8   : > { %v2995_v16 = vadd.f32 %v2920_v0, %v2823_v11 }
 0x4a9   : > { %v3869_v61 = vpop.f32.mrf.mxu1  ;;  %v2922_v62 = vpop.f32.mrf.mxu0 }
 0x4aa   : > { %v2996_v17 = vadd.f32 %v2922_v62, %v2824_v12 }
 0x4ab   : > { %v2306_v2 = vpop.f32.mrf.mxu1  ;;  %v3092_v3 = vpop.f32.mrf.mxu0 }
 0x4ac   : > { %v2307_v21 = vadd.f32 %v2306_v2, %v2145_v60  ;;  %v3167_v22 = vadd.f32 %v3092_v3, %v2995_v16 }
 0x4ad   : > { %v3874_v4 = vpop.f32.mrf.mxu1  ;;  %v3094_v5 = vpop.f32.mrf.mxu0 }
 0x4ae   : > { %v3168_v23 = vadd.f32 %v3094_v5, %v2996_v17  ;;  %v346_v4 = vld [vmem:[%s4660_s5] sm:$0xf] }
 0x4af   : > { %v2475_v8 = vpop.f32.mrf.mxu1  ;;  %v3264_v9 = vpop.f32.mrf.mxu0 }
 0x4b0   : > { %v2481_v26 = vadd.f32 %v2475_v8, %v2307_v21  ;;  %v3339_v31 = vadd.f32 %v3264_v9, %v3167_v22  ;;  %v3560_v22 = vld [vmem:[%s4151_s17] sm:$0xff] }
 0x4b1   : > { %v3879_v10 = vpop.f32.mrf.mxu1  ;;  %v3266_v14 = vpop.f32.mrf.mxu0 }
 0x4b2   : > { %v3340_v28 = vadd.f32 %v3266_v14, %v3168_v23 }
 0x4b3   : > { %v2647_v13 = vpop.f32.mrf.mxu1 }
 0x4b4   : > { %v2653_v33 = vadd.f32 %v2647_v13, %v2481_v26 }
 0x4b5   : > { %v3884_v15 = vpop.f32.mrf.mxu1 }
 0x4b6   : > { %v3436_v18 = vpop.f32.mrf.mxu0 }
 0x4b7   : > { %v2819_v19 = vpop.f32.mrf.mxu1  ;;  %v3511_v36 = vadd.f32 %v3436_v18, %v3339_v31 }
 0x4b8   : > { %v3438_v24 = vpop.f32.mrf.mxu0  ;;  %v2825_v37 = vadd.f32 %v2819_v19, %v2653_v33 }
 0x4b9   : > { %v3889_v20 = vpop.f32.mrf.mxu1  ;;  %v3512_v34 = vadd.f32 %v3438_v24, %v3340_v28  ;;  %v3514_v42 = vsel %vm4345_vm9, %v3511_v36, 0.0  ;;  %v3561_v24 = vld [vmem:[%s4151_s17 + $0x8] sm:$0xff]  ;;  %vm4698_vm9 = vmmov %vm4697_vm4 }
 0x4ba   : > { %v3525_v47 = vmul.f32 %v3514_v42, %v3511_v36  ;;  %v3517_v52 = vsel %vm377_vm2, %v3514_v42, 0.0 }
 0x4bb   : > { %v2991_v25 = vpop.f32.mrf.mxu1  ;;  %v3515_v39 = vsel %vm4353_vm6, %v3512_v34, 0.0 }
 0x4bc   : > { %v2997_v40 = vadd.f32 %v2991_v25, %v2825_v37  ;;  %v3526_v44 = vmul.f32 %v3515_v39, %v3512_v34  ;;  %v3518_v49 = vsel %vm377_vm2, %v3515_v39, 0.0  ;;  %v3528_v56 = vsel %vm377_vm2, %v3525_v47, 0.0 }
 0x4bd   : > { %v3894_v30 = vpop.f32.mrf.mxu1  ;;  %v3519_v54 = vadd.f32 %v3518_v49, %v3517_v52 }
 0x4be   : > { %v3529_v35 = vsel %vm377_vm2, %v3526_v44, 0.0 }
 0x4bf   : > { %v3163_v27 = vpop.f32.mrf.mxu1  ;;  %v3530_v58 = vadd.f32 %v3529_v35, %v3528_v56 }
 0x4c0   : > { %v3169_v43 = vadd.f32 %v3163_v27, %v2997_v40 }
 0x4c1   : > { %v3899_v38 = vpop.f32.mrf.mxu1 }
 0x4c3   : > { %v3335_v41 = vpop.f32.mrf.mxu1 }
 0x4c4   : > { %v3341_v46 = vadd.f32 %v3335_v41, %v3169_v43 }
 0x4c5   : > { %v3904_v45 = vpop.f32.mrf.mxu1 }
 0x4c7   : > { %v3507_v48 = vpop.f32.mrf.mxu1 }
 0x4c8   : > { %v3513_v50 = vadd.f32 %v3507_v48, %v3341_v46 }
 0x4c9   : > { %v3909_v51 = vpop.f32.mrf.mxu1 }
 0x4ca   : > { %v3516_v53 = vsel %vm4349_vm10, %v3513_v50, 0.0 }
 0x4cb   : > { %v3520_v29 = vsel %vm377_vm2, %v3516_v53, 0.0  ;;  %v3527_v55 = vmul.f32 %v3516_v53, %v3513_v50 }
 0x4cc   : > { %v3521_v57 = vadd.f32 %v3520_v29, %v3519_v54 }
 0x4cd   : > { %v3531_v59 = vsel %vm377_vm2, %v3527_v55, 0.0 }
 0x4ce   : > { %3522 = vadd.xlane.f32.xlu0 %v3521_v57  ;;  %v3532_v60 = vadd.f32 %v3531_v59, %v3530_v58 }
 0x4d0   : > { %3533 = vadd.xlane.f32.xlu1 %v3532_v60 }
 0x557   : > { %v3523_v0 = vpop.xlane.xlu0 %3522 }
 0x558   : > { %v3524_v61 = vmul.f32 0.00390625, %v3523_v0 }
 0x559   : > { %v3534_v62 = vpop.xlane.xlu1 %3533 }
 0x55a   : > { %v3536_v63 = vmul.f32 %v3524_v61, %v3524_v61  ;;  %v3535_v1 = vmul.f32 0.00390625, %v3534_v62 }
 0x55c   : > { %v3537_v32 = vsub.f32 %v3535_v1, %v3536_v63 }
 0x55e   : > { %v3538_v2 = vmax.f32 %v3537_v32, 0.0 }
 0x560   : > { %v3539_v3 = vadd.f32 1e-05, %v3538_v2 }
 0x562   : > { %3978 = vrsqrt.f32 %v3539_v3 }
 0x56f   : > { %v3979_v5 = vpop.eup %3978 }
 0x570   : > { %v3541_v6 = vmul.f32 %v3979_v5, %v346_v4 }
 0x572   : > { %3546 = vperm.xlu0 %3970, %v3541_v6   ;;  %v3542_v8 = vmul.f32 %v3541_v6, %v3524_v61 }
 0x574   : > { %v3543_v9 = vsub.f32 %v347_v7, %v3542_v8 }
 0x576   : > { %3554 = vperm.xlu1 %3971, %v3543_v9  }
 0x5ed   : > { %v3547_v10 = vpop.permute.xlu0 %3546 }
 0x5ee   : > { %v3549_v11 = vmul.f32 %v3547_v10, %v3511_v36  ;;  %v3550_v12 = vmul.f32 %v3547_v10, %v3512_v34  ;;  %v3551_v13 = vmul.f32 %v3547_v10, %v3513_v50 }
 0x5f1   : > { %v3555_v14 = vpop.permute.xlu1 %3554 }
 0x5f2   : > { %v3557_v15 = vadd.f32 %v3555_v14, %v3549_v11  ;;  %v3558_v16 = vadd.f32 %v3555_v14, %v3550_v12  ;;  %v3559_v17 = vadd.f32 %v3555_v14, %v3551_v13 }
 0x5f4   : > { %3568 = vrot.lane.b32.xlu1 %v3559_v17, %s4054_s15  ;;  %v3565_v18 = vcombine.low %v3557_v15, %v3558_v16 }
 0x5f6   : > { %3566 = vrot.lane.b32.xlu0 %v3565_v18, %s4054_s15  ;;  %s269_s15 = sand.u32 1, %s4032_s25  }
 0x5f7   : > { %s3910_s18 = smul.u32 12, %s269_s15  ;;  %s3595_s28 = scalar_lea.sflag [#allocation4], %s269_s15 }
 0x5f9   : > { %s271_s17 = scalar_lea.vmem [#allocation3], %s3910_s18 }
 0x5fa   : > { %s3609_s20 = sshll.u32 %s271_s17, 4  ;;  %s4615_s20 = int_to_ptr.vmem [resolvable:$true] %s3609_s20 }
 0x5fb   : > { %p3987_p0 = scmp.lt.s32.totalorder %s4615_s20, %s3985_s9 }
 0x666   : > { %v3569_v19 = vpop.permute.xlu1 %3568 }
 0x667   : > { %v3571_v21 = vrot.slane %v3569_v19, 4 }
 0x668   : > { %v3567_v20 = vpop.permute.xlu0 %3566 }
 0x669   : > { %v3570_v23 = vrot.slane %v3567_v20, 4 }
 0x66b   : > { %v3572_v25 = vsel %vm1966_vm11, %v3570_v23, %v3567_v20  ;;  %v3573_v26 = vsel %vm377_vm2, %v3570_v23, %v3571_v21 }
 0x66c   : > { %v3577_v28 = vadd.f32 %v3572_v25, %v3560_v22  ;;  %v3574_v30 = vsel %vm1966_vm11, %v3573_v26, %v3569_v19 }
 0x66d   : > { %v3578_v31 = vadd.f32 %v3574_v30, %v3561_v24 }
 0x66e   : > { %3581 = vrot.lane.b32.xlu0 %v3577_v28, %s4048_s22 }
 0x66f   : > { %3583 = vrot.lane.b32.xlu1 %v3578_v31, %s4048_s22  ;;  %s3980_s22 = scalar_lea.vmem %s4615_s20, 192 }
 0x670   : > { %p3981_p11 = scmp.ne.s32.totalorder %s4615_s20, %s3980_s22  ;;  %p3988_p1 = scmp.lt.s32.totalorder %s3986_s16, %s3980_s22 }
 0x672   : > { %p3982_p12 = pnand %p3981_p11, %p4134_p5  ;;  %p3989_p2 = por %p3988_p1, %p3987_p0 }
 0x674   : > { %p3983_p13 = pneg %p3982_p12 }
 0x676   : > { %p3990_p3 = pnand %p3989_p2, %p3983_p13 }
 0x6e0   : > { %v3582_v33 = vpop.permute.xlu0 %3581 }
 0x6e1   : > { %v3585_v34 = vrot.slane %v3582_v33, 4  ;;  %v3584_v27 = vpop.permute.xlu1 %3583 }
 0x6e2   : > { %v3586_v36 = vrot.slane %v3584_v27, 4 }
 0x6e4   : > { %v3587_v37 = vsel %vm377_vm2, %v3585_v34, %v3586_v36  ;;  %v3589_v38 = vsel %vm4697_vm4, %v3584_v27, %v3586_v36 }
 0x6e5   : > { %3593 = vst [vmem:[%s271_s17 + $0x8] sm:$0xf] %v3589_v38  ;;  %v3588_v39 = vsel %vm4698_vm9, %v3582_v33, %v3587_v37 }
 0x6e6   : > { %3592 = vst [vmem:[%s271_s17] sm:$0xff] %v3588_v39 }
 0x6e7   : > { %3993 = shalt.err (!%p3990_p3)
}
 0x6e8   : > { %s3994_s13 = scalar_lea.hbm %s4613_s29, 192  ;;  %s3998_s18 = scalar_lea.hbm %s4662_s7, 384 }
 0x6e9   : > { %p3995_p4 = scmp.ne.s32.totalorder %s4613_s29, %s3994_s13  ;;  %p3999_p9 = scmp.lt.s32.totalorder %s4613_s29, %s4662_s7 }
 0x6ea   : > { %p4000_p10 = scmp.lt.s32.totalorder %s3998_s18, %s3994_s13 }
 0x6eb   : > { %p3996_p7 = pnand %p3995_p4, %p4134_p5 }
 0x6ec   : > { %p4001_p11 = por %p4000_p10, %p3999_p9 }
 0x6ed   : > { %p3997_p8 = pneg %p3996_p7 }
 0x6ef   : > { %p4002_p12 = pnand %p4001_p11, %p3997_p8 }
 0x6f1   : > { %4005 = shalt.err (!%p4002_p12)
}
 0x6f2   : > { %3918 = dma.vmem_to_hbm [thread:$0]  (%p4134_p5), %s4615_s20, 192, %s4613_s29, %s3595_s28  }
 0x6f3 PF: > { %p3924_p13 = scmp.ge.s32.totalorder %s4040_s27, 2  ;;  %s3621_s21 = sand.u32 1, %s4028_s24  }
 0x6f4   : > { %s3622_s23 = scalar_lea.sflag [#allocation4], %s3621_s21 }
 0x6f5   : > { %p3921_p0 = pnand %p3924_p13, %p4138_p6 }
 0x6f7   : > { %p3922_p1 = pneg %p3921_p0 }
 0x6f9   : > { %4023 = dma.done.wait (%p3922_p1), %s3622_s23, 192  }
 0x6fa   : > { %4025 = vsyncadd (%p3922_p1), %s3622_s23, 4294967104  ;;  %p17_p2 = scmp.ge.s32.totalorder %s4121_s30, 4   ;;  %s4699_s24 = smov %s4032_s25 }
 0x6fb   : > { %s4700_s25 = smov %s4036_s26  ;;  %s4701_s26 = smov %s4132_s10 }
 0x6fc   : > { %s4702_s27 = smov %s4121_s30  ;;  %19 = sbr.rel (!%p17_p2) target bundleno = 3 (0x3), region = 99 }
 0x701   :  { %3627 = vsyncpa [#allocation4], 1 }
 0x702   :  { %3629 = vsyncpa [#allocation4 + $0x1], 1 }

</bundles_post_ra>
